<compile_context>
chip_gen: v6e
topology: v6e:2x2x1
jax: 0.10.0
libtpu: 0.0.40
codegen_flags: <defaults>
</compile_context>

<pallas_src>
import functools

import numpy as np
import jax
import jax.numpy as jnp
from jax import lax
from jax.experimental import pallas as pl
from jax.experimental.pallas import tpu as pltpu


# ------------------------------ fused kernel ------------------------------- #

def _triplet_fused_kernel(x_ref, mpos_ref, mnegf_ref, avg_ref, num_ref, dflat_sc,
                          *, n, p_tile, margin, lamda, coef):
    m = n * n
    pn = p_tile * n
    mpos = mpos_ref[...]        # [n, n]  positive-pair validity (0/1), symmetric
    mneg = mnegf_ref[...]       # [1, m]  negative-pair validity, row-major flat

    lam = float(lamda)
    is_int_lam = (lam == round(lam)) and lam >= 1.0
    ilam = int(round(lam)) if is_int_lam else 0

    # --- batched prologue: one MXU pass for all parts in this grid step ---
    x_all = x_ref[...]                                             # [pn, c]
    inner_all = lax.dot_general(
        x_all, x_all, dimension_numbers=(((1,), (1,)), ((), ())),
        preferred_element_type=jnp.float32)                        # [pn, pn]
    rows = lax.broadcasted_iota(jnp.int32, (pn, pn), 0)
    cols = lax.broadcasted_iota(jnp.int32, (pn, pn), 1)
    diag = jnp.where(rows == cols, inner_all, 0.0)                 # Gram diagonal
    sq_col = jnp.sum(diag, axis=1, keepdims=True)                  # [pn, 1]
    sq_row = jnp.sum(diag, axis=0, keepdims=True)                  # [1, pn]
    d2_all = sq_col + sq_row - 2.0 * inner_all
    dist_all = jnp.sqrt(jnp.maximum(d2_all, 0.0) + 1e-9)           # [pn, pn]
    # (off-diagonal part-cross blocks of dist_all are computed but never read)

    # --- flatten each part's [n, n] dist block into a lane-dense [1, m] row ---
    # Every lane of row pt is written before it is read below.
    for pt in range(p_tile):
        b = pt * n
        for i in range(n):
            dflat_sc[pt:pt + 1, i * n:(i + 1) * n] = dist_all[b + i:b + i + 1, b:b + n]

    lane_idx = lax.broadcasted_iota(jnp.int32, (1, p_tile), 1)
    avg_row = jnp.zeros((1, p_tile), jnp.float32)
    num_row = jnp.zeros((1, p_tile), jnp.float32)

    for pt in range(p_tile):
        b = pt * n
        dist = dist_all[b:b + n, b:b + n]                          # [n, n]
        # Invalid positive pairs -> -1e30 so their hinge is exactly 0 (drops the
        # per-slab mpos-column multiply from the inner loop).
        d_pos = jnp.where(mpos > 0.0, dist, -1e30)                 # [n, n]
        # Margin folded once into the flat negative vector.
        d_neg = dflat_sc[pt:pt + 1, :] - margin                    # [1, m]

        # Slab loop over positive columns; reductions and the negative mask are
        # deferred to the epilogue via running [n, m] accumulators (no XLU / no
        # scalar-carried dependency inside the loop).
        acc_s = jnp.zeros((n, m), jnp.float32)
        acc_c = jnp.zeros((n, m), jnp.float32)
        for i in range(n):
            h = jnp.maximum(d_pos[:, i:i + 1] - d_neg, 0.0)        # [n, m]
            if is_int_lam:
                pw = h
                for _ in range(ilam - 1):                          # VPU multiplies only
                    pw = pw * h
            else:
                pw = jnp.where(h > 0.0, jnp.power(h, lam), 0.0)    # EUP path
            acc_s = acc_s + pw
            acc_c = acc_c + jnp.where(h > 0.0, 1.0, 0.0)

        # Epilogue: apply the negative mask and reduce once per part.
        masked_s = acc_s * mneg
        masked_c = acc_c * mneg
        loss_sum = jnp.sum(jnp.sum(masked_s, axis=1, keepdims=True),
                           axis=0, keepdims=True) * coef           # [1, 1]
        loss_num = jnp.sum(jnp.sum(masked_c, axis=1, keepdims=True),
                           axis=0, keepdims=True)                  # [1, 1]
        loss_avg = jnp.where(loss_num == 0.0, 0.0, loss_sum / (loss_num + 1e-9))

        sel = lane_idx == pt
        avg_row = jnp.where(sel, loss_avg, avg_row)
        num_row = jnp.where(sel, loss_num, num_row)

    # single lane-dense store per output per grid step
    avg_ref[...] = avg_row
    num_ref[...] = num_row


# -------------------------------- wrapper ---------------------------------- #

def triplet_loss_pallas(embeddings, labels, *, margin, scale, lamda):
    """embeddings: [n, c, p] float, labels: [n] int32 -> (loss_avg[p], loss_num[p])."""
    n, c, p = embeddings.shape
    x = jnp.transpose(embeddings, (2, 0, 1)).astype(jnp.float32)     # [p, n, c]

    # Parts per grid step. On a 2-TensorCore chip (v7x) split the part axis into two
    # grid steps so both cores work; on single-TC chips keep one step (no per-step
    # pipeline overhead).
    p_tile = p if p <= 8 else 8
    try:
        kind = jax.devices()[0].device_kind.lower()
    except Exception:
        kind = ""
    if "v7" in kind and p >= 2:
        p_tile = -(-p // 2)

    p_pad = -(-p // p_tile) * p_tile
    if p_pad != p:
        # padded zero-embedding parts compute a discarded (finite) loss; harmless
        x = jnp.pad(x, ((0, p_pad - p), (0, 0), (0, 0)))
    nblocks = p_pad // p_tile
    pn = p_tile * n
    x3 = x.reshape(nblocks, pn, c)                                    # block-major parts

    m = n * n
    same = labels[:, None] == labels[None, :]
    mpos = jnp.logical_and(same, ~jnp.eye(n, dtype=bool)).astype(jnp.float32)  # [n, n]
    mneg_flat = jnp.logical_not(same).astype(jnp.float32).reshape(1, m)        # [1, m]

    balance = float(np.power(margin, 1.0 / lamda) / margin)
    coef = float((balance ** float(lamda)) * scale)   # hoisted constant scaling
    kernel = functools.partial(
        _triplet_fused_kernel, n=n, p_tile=p_tile, margin=float(margin),
        lamda=float(lamda), coef=coef)

    avg3, num3 = pl.pallas_call(
        kernel,
        out_shape=(jax.ShapeDtypeStruct((nblocks, 1, p_tile), jnp.float32),
                   jax.ShapeDtypeStruct((nblocks, 1, p_tile), jnp.float32)),
        grid=(nblocks,),
        in_specs=[pl.BlockSpec((None, pn, c), lambda i: (i, 0, 0)),
                  pl.BlockSpec((n, n), lambda i: (0, 0)),
                  pl.BlockSpec((1, m), lambda i: (0, 0))],
        out_specs=(pl.BlockSpec((None, 1, p_tile), lambda i: (i, 0, 0)),
                   pl.BlockSpec((None, 1, p_tile), lambda i: (i, 0, 0))),
        scratch_shapes=[pltpu.VMEM((p_tile, m), jnp.float32)],
        compiler_params=pltpu.CompilerParams(dimension_semantics=("parallel",)),
    )(x3, mpos, mneg_flat)

    loss_avg = avg3.reshape(p_pad)[:p]
    loss_num = num3.reshape(p_pad)[:p]
    return loss_avg, loss_num


# ------------------------------- reference --------------------------------- #

def triplet_loss_reference(embeddings, labels, *, margin, scale, lamda):
    balance = np.power(margin, 1.0 / lamda) / margin
    emb = jnp.transpose(embeddings, (2, 0, 1)).astype(jnp.float32)   # [p, n, c]
    p, n, _ = emb.shape
    x2 = jnp.sum(emb ** 2, -1)[:, :, None]
    y2 = jnp.sum(emb ** 2, -1)[:, None, :]
    inner = jnp.einsum('pnc,pmc->pnm', emb, emb)
    dist = jnp.sqrt(jax.nn.relu(x2 + y2 - 2.0 * inner) + 1e-9)

    same = labels[:, None] == labels[None, :]
    matches = jnp.logical_and(same, ~jnp.eye(n, dtype=bool))
    diffenc = jnp.logical_not(same)

    d_flat = dist.reshape(p, n * n)
    diff = d_flat[:, :, None] - d_flat[:, None, :]
    loss = jnp.power(balance * jax.nn.relu(diff + margin), lamda) * scale
    valid = matches.reshape(-1)[None, :, None] & diffenc.reshape(-1)[None, None, :]
    loss = jnp.where(valid, loss, 0.0)

    loss_sum = loss.sum((1, 2))
    loss_num = (loss != 0.0).sum((1, 2)).astype(jnp.float32)
    loss_avg = loss_sum / (loss_num + 1e-9)
    loss_avg = jnp.where(loss_num == 0.0, 0.0, loss_avg)
    return loss_avg, loss_num


# --------------------------------- main ------------------------------------ #

if __name__ == "__main__":
    # module "parameters" (from __init__), set deterministically in-script
    margin, scale, lamda = 0.2, 16.0, 2.0

    key = jax.random.PRNGKey(0)
    k1, k2 = jax.random.split(key)
    n, c, p = 8, 16, 4                       # batch, channels, parts
    embeddings = jax.random.normal(k1, (n, c, p), jnp.float32)   # PyTorch layout [n, c, p]
    labels = jax.random.randint(k2, (n,), 0, 3, jnp.int32)

    loss_avg, loss_num = triplet_loss_pallas(
        embeddings, labels, margin=margin, scale=scale, lamda=lamda)
    jax.block_until_ready((loss_avg, loss_num))

    ref_avg, ref_num = triplet_loss_reference(
        embeddings, labels, margin=margin, scale=scale, lamda=lamda)

    assert np.allclose(np.asarray(loss_avg), np.asarray(ref_avg),
                       rtol=1e-3, atol=1e-3), (loss_avg, ref_avg)
    assert np.allclose(np.asarray(loss_num), np.asarray(ref_num),
                       rtol=0, atol=0.5), (loss_num, ref_num)

    print("KERNEL_OK")
</pallas_src>

<mosaic_0001>
module attributes {stable_mosaic.version = 11 : i64} {
  func.func @_triplet_fused_kernel(%arg0: i32, %arg1: memref<1x32x16xf32, #tpu.memory_space<vmem>>, %arg2: memref<8x8xf32, #tpu.memory_space<vmem>>, %arg3: memref<1x64xf32, #tpu.memory_space<vmem>>, %arg4: memref<1x1x4xf32, #tpu.memory_space<vmem>>, %arg5: memref<1x1x4xf32, #tpu.memory_space<vmem>>, %arg6: memref<4x64xf32, #tpu.memory_space<vmem>>) attributes {dimension_semantics = [#tpu.dimension_semantics<parallel>], iteration_bounds = array<i64: 1>, scalar_prefetch = 0 : i64, scratch_operands = 1 : i64, tpu.core_type = #tpu.core_type<tc>, window_params = [{transform_indices = @transform_0, window_bounds = array<i64: 1, 32, 16>}, {pipeline_mode = #tpu.pipeline_mode<synchronous>, transform_indices = @transform_1, window_bounds = array<i64: 8, 8>}, {pipeline_mode = #tpu.pipeline_mode<synchronous>, transform_indices = @transform_2, window_bounds = array<i64: 1, 64>}, {transform_indices = @transform_3, window_bounds = array<i64: 1, 1, 4>}, {transform_indices = @transform_4, window_bounds = array<i64: 1, 1, 4>}]} {
    %c0 = arith.constant 0 : index
    %c0_0 = arith.constant 0 : index
    %0 = vector.load %arg2[%c0, %c0_0] : memref<8x8xf32, #tpu.memory_space<vmem>>, vector<8x8xf32>
    %c0_1 = arith.constant 0 : index
    %c0_2 = arith.constant 0 : index
    %1 = vector.load %arg3[%c0_1, %c0_2] : memref<1x64xf32, #tpu.memory_space<vmem>>, vector<1x64xf32>
    %c0_3 = arith.constant 0 : index
    %c0_4 = arith.constant 0 : index
    %c0_5 = arith.constant 0 : index
    %2 = vector.load %arg1[%c0_3, %c0_4, %c0_5] : memref<1x32x16xf32, #tpu.memory_space<vmem>>, vector<1x32x16xf32>
    %3 = vector.shape_cast %2 : vector<1x32x16xf32> to vector<32x16xf32>
    %cst = arith.constant dense<0.000000e+00> : vector<32x32xf32>
    %4 = tpu.matmul %3, %3, %cst {dimension_numbers = #tpu.dot_dimension_numbers<[1], [1], [0], [0], [0, 0, 1, 0], [], []>} : vector<32x16xf32>, vector<32x16xf32>, vector<32x32xf32> -> vector<32x32xf32>
    %5 = tpu.iota {dimensions = array<i32: 0>} : vector<32x32xi32>
    %6 = tpu.iota {dimensions = array<i32: 1>} : vector<32x32xi32>
    %7 = arith.cmpi eq, %5, %6 : vector<32x32xi32>
    %cst_6 = arith.constant 0.000000e+00 : f32
    %8 = vector.broadcast %cst_6 : f32 to vector<32x32xf32>
    %9 = arith.select %7, %4, %8 : vector<32x32xi1>, vector<32x32xf32>
    %cst_7 = arith.constant dense<0.000000e+00> : vector<32xf32>
    %10 = vector.multi_reduction <add>, %9, %cst_7 [1] : vector<32x32xf32> to vector<32xf32>
    %11 = vector.shape_cast %10 : vector<32xf32> to vector<32x1xf32>
    %cst_8 = arith.constant dense<0.000000e+00> : vector<32xf32>
    %12 = vector.multi_reduction <add>, %9, %cst_8 [0] : vector<32x32xf32> to vector<32xf32>
    %13 = vector.shape_cast %12 : vector<32xf32> to vector<1x32xf32>
    %14 = vector.broadcast %11 : vector<32x1xf32> to vector<32x32xf32>
    %15 = vector.broadcast %13 : vector<1x32xf32> to vector<32x32xf32>
    %16 = arith.addf %14, %15 : vector<32x32xf32>
    %cst_9 = arith.constant 2.000000e+00 : f32
    %17 = vector.broadcast %cst_9 : f32 to vector<32x32xf32>
    %18 = arith.mulf %17, %4 : vector<32x32xf32>
    %19 = arith.subf %16, %18 : vector<32x32xf32>
    %cst_10 = arith.constant 0.000000e+00 : f32
    %20 = vector.broadcast %cst_10 : f32 to vector<32x32xf32>
    %21 = arith.maximumf %19, %20 : vector<32x32xf32>
    %cst_11 = arith.constant 9.99999971E-10 : f32
    %22 = vector.broadcast %cst_11 : f32 to vector<32x32xf32>
    %23 = arith.addf %21, %22 : vector<32x32xf32>
    %24 = math.sqrt %23 : vector<32x32xf32>
    %25 = vector.extract_strided_slice %24 {offsets = [0, 0], sizes = [1, 8], strides = [1, 1]} : vector<32x32xf32> to vector<1x8xf32>
    %c0_12 = arith.constant 0 : index
    %c0_13 = arith.constant 0 : index
    %26 = vector.load %arg6[%c0_12, %c0_13] : memref<4x64xf32, #tpu.memory_space<vmem>>, vector<1x8xf32>
    tpu.vector_store %arg6[%c0_12, %c0_13], %25 {strides = array<i32>} : memref<4x64xf32, #tpu.memory_space<vmem>>, vector<1x8xf32>,
    %27 = vector.extract_strided_slice %24 {offsets = [1, 0], sizes = [1, 8], strides = [1, 1]} : vector<32x32xf32> to vector<1x8xf32>
    %c0_14 = arith.constant 0 : index
    %c8 = arith.constant 8 : index
    %28 = vector.load %arg6[%c0_14, %c8] : memref<4x64xf32, #tpu.memory_space<vmem>>, vector<1x8xf32>
    tpu.vector_store %arg6[%c0_14, %c8], %27 {strides = array<i32>} : memref<4x64xf32, #tpu.memory_space<vmem>>, vector<1x8xf32>,
    %29 = vector.extract_strided_slice %24 {offsets = [2, 0], sizes = [1, 8], strides = [1, 1]} : vector<32x32xf32> to vector<1x8xf32>
    %c0_15 = arith.constant 0 : index
    %c16 = arith.constant 16 : index
    %30 = vector.load %arg6[%c0_15, %c16] : memref<4x64xf32, #tpu.memory_space<vmem>>, vector<1x8xf32>
    tpu.vector_store %arg6[%c0_15, %c16], %29 {strides = array<i32>} : memref<4x64xf32, #tpu.memory_space<vmem>>, vector<1x8xf32>,
    %31 = vector.extract_strided_slice %24 {offsets = [3, 0], sizes = [1, 8], strides = [1, 1]} : vector<32x32xf32> to vector<1x8xf32>
    %c0_16 = arith.constant 0 : index
    %c24 = arith.constant 24 : index
    %32 = vector.load %arg6[%c0_16, %c24] : memref<4x64xf32, #tpu.memory_space<vmem>>, vector<1x8xf32>
    tpu.vector_store %arg6[%c0_16, %c24], %31 {strides = array<i32>} : memref<4x64xf32, #tpu.memory_space<vmem>>, vector<1x8xf32>,
    %33 = vector.extract_strided_slice %24 {offsets = [4, 0], sizes = [1, 8], strides = [1, 1]} : vector<32x32xf32> to vector<1x8xf32>
    %c0_17 = arith.constant 0 : index
    %c32 = arith.constant 32 : index
    %34 = vector.load %arg6[%c0_17, %c32] : memref<4x64xf32, #tpu.memory_space<vmem>>, vector<1x8xf32>
    tpu.vector_store %arg6[%c0_17, %c32], %33 {strides = array<i32>} : memref<4x64xf32, #tpu.memory_space<vmem>>, vector<1x8xf32>,
    %35 = vector.extract_strided_slice %24 {offsets = [5, 0], sizes = [1, 8], strides = [1, 1]} : vector<32x32xf32> to vector<1x8xf32>
    %c0_18 = arith.constant 0 : index
    %c40 = arith.constant 40 : index
    %36 = vector.load %arg6[%c0_18, %c40] : memref<4x64xf32, #tpu.memory_space<vmem>>, vector<1x8xf32>
    tpu.vector_store %arg6[%c0_18, %c40], %35 {strides = array<i32>} : memref<4x64xf32, #tpu.memory_space<vmem>>, vector<1x8xf32>,
    %37 = vector.extract_strided_slice %24 {offsets = [6, 0], sizes = [1, 8], strides = [1, 1]} : vector<32x32xf32> to vector<1x8xf32>
    %c0_19 = arith.constant 0 : index
    %c48 = arith.constant 48 : index
    %38 = vector.load %arg6[%c0_19, %c48] : memref<4x64xf32, #tpu.memory_space<vmem>>, vector<1x8xf32>
    tpu.vector_store %arg6[%c0_19, %c48], %37 {strides = array<i32>} : memref<4x64xf32, #tpu.memory_space<vmem>>, vector<1x8xf32>,
    %39 = vector.extract_strided_slice %24 {offsets = [7, 0], sizes = [1, 8], strides = [1, 1]} : vector<32x32xf32> to vector<1x8xf32>
    %c0_20 = arith.constant 0 : index
    %c56 = arith.constant 56 : index
    %40 = vector.load %arg6[%c0_20, %c56] : memref<4x64xf32, #tpu.memory_space<vmem>>, vector<1x8xf32>
    tpu.vector_store %arg6[%c0_20, %c56], %39 {strides = array<i32>} : memref<4x64xf32, #tpu.memory_space<vmem>>, vector<1x8xf32>,
    %41 = vector.extract_strided_slice %24 {offsets = [8, 8], sizes = [1, 8], strides = [1, 1]} : vector<32x32xf32> to vector<1x8xf32>
    %c1 = arith.constant 1 : index
    %c0_21 = arith.constant 0 : index
    %42 = vector.load %arg6[%c1, %c0_21] : memref<4x64xf32, #tpu.memory_space<vmem>>, vector<1x8xf32>
    tpu.vector_store %arg6[%c1, %c0_21], %41 {strides = array<i32>} : memref<4x64xf32, #tpu.memory_space<vmem>>, vector<1x8xf32>,
    %43 = vector.extract_strided_slice %24 {offsets = [9, 8], sizes = [1, 8], strides = [1, 1]} : vector<32x32xf32> to vector<1x8xf32>
    %c1_22 = arith.constant 1 : index
    %c8_23 = arith.constant 8 : index
    %44 = vector.load %arg6[%c1_22, %c8_23] : memref<4x64xf32, #tpu.memory_space<vmem>>, vector<1x8xf32>
    tpu.vector_store %arg6[%c1_22, %c8_23], %43 {strides = array<i32>} : memref<4x64xf32, #tpu.memory_space<vmem>>, vector<1x8xf32>,
    %45 = vector.extract_strided_slice %24 {offsets = [10, 8], sizes = [1, 8], strides = [1, 1]} : vector<32x32xf32> to vector<1x8xf32>
    %c1_24 = arith.constant 1 : index
    %c16_25 = arith.constant 16 : index
    %46 = vector.load %arg6[%c1_24, %c16_25] : memref<4x64xf32, #tpu.memory_space<vmem>>, vector<1x8xf32>
    tpu.vector_store %arg6[%c1_24, %c16_25], %45 {strides = array<i32>} : memref<4x64xf32, #tpu.memory_space<vmem>>, vector<1x8xf32>,
    %47 = vector.extract_strided_slice %24 {offsets = [11, 8], sizes = [1, 8], strides = [1, 1]} : vector<32x32xf32> to vector<1x8xf32>
    %c1_26 = arith.constant 1 : index
    %c24_27 = arith.constant 24 : index
    %48 = vector.load %arg6[%c1_26, %c24_27] : memref<4x64xf32, #tpu.memory_space<vmem>>, vector<1x8xf32>
    tpu.vector_store %arg6[%c1_26, %c24_27], %47 {strides = array<i32>} : memref<4x64xf32, #tpu.memory_space<vmem>>, vector<1x8xf32>,
    %49 = vector.extract_strided_slice %24 {offsets = [12, 8], sizes = [1, 8], strides = [1, 1]} : vector<32x32xf32> to vector<1x8xf32>
    %c1_28 = arith.constant 1 : index
    %c32_29 = arith.constant 32 : index
    %50 = vector.load %arg6[%c1_28, %c32_29] : memref<4x64xf32, #tpu.memory_space<vmem>>, vector<1x8xf32>
    tpu.vector_store %arg6[%c1_28, %c32_29], %49 {strides = array<i32>} : memref<4x64xf32, #tpu.memory_space<vmem>>, vector<1x8xf32>,
    %51 = vector.extract_strided_slice %24 {offsets = [13, 8], sizes = [1, 8], strides = [1, 1]} : vector<32x32xf32> to vector<1x8xf32>
    %c1_30 = arith.constant 1 : index
    %c40_31 = arith.constant 40 : index
    %52 = vector.load %arg6[%c1_30, %c40_31] : memref<4x64xf32, #tpu.memory_space<vmem>>, vector<1x8xf32>
    tpu.vector_store %arg6[%c1_30, %c40_31], %51 {strides = array<i32>} : memref<4x64xf32, #tpu.memory_space<vmem>>, vector<1x8xf32>,
    %53 = vector.extract_strided_slice %24 {offsets = [14, 8], sizes = [1, 8], strides = [1, 1]} : vector<32x32xf32> to vector<1x8xf32>
    %c1_32 = arith.constant 1 : index
    %c48_33 = arith.constant 48 : index
    %54 = vector.load %arg6[%c1_32, %c48_33] : memref<4x64xf32, #tpu.memory_space<vmem>>, vector<1x8xf32>
    tpu.vector_store %arg6[%c1_32, %c48_33], %53 {strides = array<i32>} : memref<4x64xf32, #tpu.memory_space<vmem>>, vector<1x8xf32>,
    %55 = vector.extract_strided_slice %24 {offsets = [15, 8], sizes = [1, 8], strides = [1, 1]} : vector<32x32xf32> to vector<1x8xf32>
    %c1_34 = arith.constant 1 : index
    %c56_35 = arith.constant 56 : index
    %56 = vector.load %arg6[%c1_34, %c56_35] : memref<4x64xf32, #tpu.memory_space<vmem>>, vector<1x8xf32>
    tpu.vector_store %arg6[%c1_34, %c56_35], %55 {strides = array<i32>} : memref<4x64xf32, #tpu.memory_space<vmem>>, vector<1x8xf32>,
    %57 = vector.extract_strided_slice %24 {offsets = [16, 16], sizes = [1, 8], strides = [1, 1]} : vector<32x32xf32> to vector<1x8xf32>
    %c2 = arith.constant 2 : index
    %c0_36 = arith.constant 0 : index
    %58 = vector.load %arg6[%c2, %c0_36] : memref<4x64xf32, #tpu.memory_space<vmem>>, vector<1x8xf32>
    tpu.vector_store %arg6[%c2, %c0_36], %57 {strides = array<i32>} : memref<4x64xf32, #tpu.memory_space<vmem>>, vector<1x8xf32>,
    %59 = vector.extract_strided_slice %24 {offsets = [17, 16], sizes = [1, 8], strides = [1, 1]} : vector<32x32xf32> to vector<1x8xf32>
    %c2_37 = arith.constant 2 : index
    %c8_38 = arith.constant 8 : index
    %60 = vector.load %arg6[%c2_37, %c8_38] : memref<4x64xf32, #tpu.memory_space<vmem>>, vector<1x8xf32>
    tpu.vector_store %arg6[%c2_37, %c8_38], %59 {strides = array<i32>} : memref<4x64xf32, #tpu.memory_space<vmem>>, vector<1x8xf32>,
    %61 = vector.extract_strided_slice %24 {offsets = [18, 16], sizes = [1, 8], strides = [1, 1]} : vector<32x32xf32> to vector<1x8xf32>
    %c2_39 = arith.constant 2 : index
    %c16_40 = arith.constant 16 : index
    %62 = vector.load %arg6[%c2_39, %c16_40] : memref<4x64xf32, #tpu.memory_space<vmem>>, vector<1x8xf32>
    tpu.vector_store %arg6[%c2_39, %c16_40], %61 {strides = array<i32>} : memref<4x64xf32, #tpu.memory_space<vmem>>, vector<1x8xf32>,
    %63 = vector.extract_strided_slice %24 {offsets = [19, 16], sizes = [1, 8], strides = [1, 1]} : vector<32x32xf32> to vector<1x8xf32>
    %c2_41 = arith.constant 2 : index
    %c24_42 = arith.constant 24 : index
    %64 = vector.load %arg6[%c2_41, %c24_42] : memref<4x64xf32, #tpu.memory_space<vmem>>, vector<1x8xf32>
    tpu.vector_store %arg6[%c2_41, %c24_42], %63 {strides = array<i32>} : memref<4x64xf32, #tpu.memory_space<vmem>>, vector<1x8xf32>,
    %65 = vector.extract_strided_slice %24 {offsets = [20, 16], sizes = [1, 8], strides = [1, 1]} : vector<32x32xf32> to vector<1x8xf32>
    %c2_43 = arith.constant 2 : index
    %c32_44 = arith.constant 32 : index
    %66 = vector.load %arg6[%c2_43, %c32_44] : memref<4x64xf32, #tpu.memory_space<vmem>>, vector<1x8xf32>
    tpu.vector_store %arg6[%c2_43, %c32_44], %65 {strides = array<i32>} : memref<4x64xf32, #tpu.memory_space<vmem>>, vector<1x8xf32>,
    %67 = vector.extract_strided_slice %24 {offsets = [21, 16], sizes = [1, 8], strides = [1, 1]} : vector<32x32xf32> to vector<1x8xf32>
    %c2_45 = arith.constant 2 : index
    %c40_46 = arith.constant 40 : index
    %68 = vector.load %arg6[%c2_45, %c40_46] : memref<4x64xf32, #tpu.memory_space<vmem>>, vector<1x8xf32>
    tpu.vector_store %arg6[%c2_45, %c40_46], %67 {strides = array<i32>} : memref<4x64xf32, #tpu.memory_space<vmem>>, vector<1x8xf32>,
    %69 = vector.extract_strided_slice %24 {offsets = [22, 16], sizes = [1, 8], strides = [1, 1]} : vector<32x32xf32> to vector<1x8xf32>
    %c2_47 = arith.constant 2 : index
    %c48_48 = arith.constant 48 : index
    %70 = vector.load %arg6[%c2_47, %c48_48] : memref<4x64xf32, #tpu.memory_space<vmem>>, vector<1x8xf32>
    tpu.vector_store %arg6[%c2_47, %c48_48], %69 {strides = array<i32>} : memref<4x64xf32, #tpu.memory_space<vmem>>, vector<1x8xf32>,
    %71 = vector.extract_strided_slice %24 {offsets = [23, 16], sizes = [1, 8], strides = [1, 1]} : vector<32x32xf32> to vector<1x8xf32>
    %c2_49 = arith.constant 2 : index
    %c56_50 = arith.constant 56 : index
    %72 = vector.load %arg6[%c2_49, %c56_50] : memref<4x64xf32, #tpu.memory_space<vmem>>, vector<1x8xf32>
    tpu.vector_store %arg6[%c2_49, %c56_50], %71 {strides = array<i32>} : memref<4x64xf32, #tpu.memory_space<vmem>>, vector<1x8xf32>,
    %73 = vector.extract_strided_slice %24 {offsets = [24, 24], sizes = [1, 8], strides = [1, 1]} : vector<32x32xf32> to vector<1x8xf32>
    %c3 = arith.constant 3 : index
    %c0_51 = arith.constant 0 : index
    %74 = vector.load %arg6[%c3, %c0_51] : memref<4x64xf32, #tpu.memory_space<vmem>>, vector<1x8xf32>
    tpu.vector_store %arg6[%c3, %c0_51], %73 {strides = array<i32>} : memref<4x64xf32, #tpu.memory_space<vmem>>, vector<1x8xf32>,
    %75 = vector.extract_strided_slice %24 {offsets = [25, 24], sizes = [1, 8], strides = [1, 1]} : vector<32x32xf32> to vector<1x8xf32>
    %c3_52 = arith.constant 3 : index
    %c8_53 = arith.constant 8 : index
    %76 = vector.load %arg6[%c3_52, %c8_53] : memref<4x64xf32, #tpu.memory_space<vmem>>, vector<1x8xf32>
    tpu.vector_store %arg6[%c3_52, %c8_53], %75 {strides = array<i32>} : memref<4x64xf32, #tpu.memory_space<vmem>>, vector<1x8xf32>,
    %77 = vector.extract_strided_slice %24 {offsets = [26, 24], sizes = [1, 8], strides = [1, 1]} : vector<32x32xf32> to vector<1x8xf32>
    %c3_54 = arith.constant 3 : index
    %c16_55 = arith.constant 16 : index
    %78 = vector.load %arg6[%c3_54, %c16_55] : memref<4x64xf32, #tpu.memory_space<vmem>>, vector<1x8xf32>
    tpu.vector_store %arg6[%c3_54, %c16_55], %77 {strides = array<i32>} : memref<4x64xf32, #tpu.memory_space<vmem>>, vector<1x8xf32>,
    %79 = vector.extract_strided_slice %24 {offsets = [27, 24], sizes = [1, 8], strides = [1, 1]} : vector<32x32xf32> to vector<1x8xf32>
    %c3_56 = arith.constant 3 : index
    %c24_57 = arith.constant 24 : index
    %80 = vector.load %arg6[%c3_56, %c24_57] : memref<4x64xf32, #tpu.memory_space<vmem>>, vector<1x8xf32>
    tpu.vector_store %arg6[%c3_56, %c24_57], %79 {strides = array<i32>} : memref<4x64xf32, #tpu.memory_space<vmem>>, vector<1x8xf32>,
    %81 = vector.extract_strided_slice %24 {offsets = [28, 24], sizes = [1, 8], strides = [1, 1]} : vector<32x32xf32> to vector<1x8xf32>
    %c3_58 = arith.constant 3 : index
    %c32_59 = arith.constant 32 : index
    %82 = vector.load %arg6[%c3_58, %c32_59] : memref<4x64xf32, #tpu.memory_space<vmem>>, vector<1x8xf32>
    tpu.vector_store %arg6[%c3_58, %c32_59], %81 {strides = array<i32>} : memref<4x64xf32, #tpu.memory_space<vmem>>, vector<1x8xf32>,
    %83 = vector.extract_strided_slice %24 {offsets = [29, 24], sizes = [1, 8], strides = [1, 1]} : vector<32x32xf32> to vector<1x8xf32>
    %c3_60 = arith.constant 3 : index
    %c40_61 = arith.constant 40 : index
    %84 = vector.load %arg6[%c3_60, %c40_61] : memref<4x64xf32, #tpu.memory_space<vmem>>, vector<1x8xf32>
    tpu.vector_store %arg6[%c3_60, %c40_61], %83 {strides = array<i32>} : memref<4x64xf32, #tpu.memory_space<vmem>>, vector<1x8xf32>,
    %85 = vector.extract_strided_slice %24 {offsets = [30, 24], sizes = [1, 8], strides = [1, 1]} : vector<32x32xf32> to vector<1x8xf32>
    %c3_62 = arith.constant 3 : index
    %c48_63 = arith.constant 48 : index
    %86 = vector.load %arg6[%c3_62, %c48_63] : memref<4x64xf32, #tpu.memory_space<vmem>>, vector<1x8xf32>
    tpu.vector_store %arg6[%c3_62, %c48_63], %85 {strides = array<i32>} : memref<4x64xf32, #tpu.memory_space<vmem>>, vector<1x8xf32>,
    %87 = vector.extract_strided_slice %24 {offsets = [31, 24], sizes = [1, 8], strides = [1, 1]} : vector<32x32xf32> to vector<1x8xf32>
    %c3_64 = arith.constant 3 : index
    %c56_65 = arith.constant 56 : index
    %88 = vector.load %arg6[%c3_64, %c56_65] : memref<4x64xf32, #tpu.memory_space<vmem>>, vector<1x8xf32>
    tpu.vector_store %arg6[%c3_64, %c56_65], %87 {strides = array<i32>} : memref<4x64xf32, #tpu.memory_space<vmem>>, vector<1x8xf32>,
    %89 = tpu.iota {dimensions = array<i32: 1>} : vector<1x4xi32>
    %cst_66 = arith.constant 0.000000e+00 : f32
    %90 = vector.broadcast %cst_66 : f32 to vector<1x4xf32>
    %cst_67 = arith.constant 0.000000e+00 : f32
    %91 = vector.broadcast %cst_67 : f32 to vector<1x4xf32>
    %92 = vector.extract_strided_slice %24 {offsets = [0, 0], sizes = [8, 8], strides = [1, 1]} : vector<32x32xf32> to vector<8x8xf32>
    %cst_68 = arith.constant 0.000000e+00 : f32
    %93 = vector.broadcast %cst_68 : f32 to vector<8x8xf32>
    %94 = arith.cmpf ogt, %0, %93 : vector<8x8xf32>
    %cst_69 = arith.constant -1.000000e+30 : f32
    %95 = vector.broadcast %cst_69 : f32 to vector<8x8xf32>
    %96 = arith.select %94, %92, %95 : vector<8x8xi1>, vector<8x8xf32>
    %c0_70 = arith.constant 0 : index
    %c0_71 = arith.constant 0 : index
    %97 = vector.load %arg6[%c0_70, %c0_71] : memref<4x64xf32, #tpu.memory_space<vmem>>, vector<1x64xf32>
    %cst_72 = arith.constant 2.000000e-01 : f32
    %98 = vector.broadcast %cst_72 : f32 to vector<1x64xf32>
    %99 = arith.subf %97, %98 : vector<1x64xf32>
    %cst_73 = arith.constant 0.000000e+00 : f32
    %100 = vector.broadcast %cst_73 : f32 to vector<8x64xf32>
    %cst_74 = arith.constant 0.000000e+00 : f32
    %101 = vector.broadcast %cst_74 : f32 to vector<8x64xf32>
    %102 = vector.extract_strided_slice %96 {offsets = [0, 0], sizes = [8, 1], strides = [1, 1]} : vector<8x8xf32> to vector<8x1xf32>
    %103 = vector.broadcast %102 : vector<8x1xf32> to vector<8x64xf32>
    %104 = vector.broadcast %99 : vector<1x64xf32> to vector<8x64xf32>
    %105 = arith.subf %103, %104 : vector<8x64xf32>
    %cst_75 = arith.constant 0.000000e+00 : f32
    %106 = vector.broadcast %cst_75 : f32 to vector<8x64xf32>
    %107 = arith.maximumf %105, %106 : vector<8x64xf32>
    %108 = arith.mulf %107, %107 : vector<8x64xf32>
    %109 = arith.addf %100, %108 : vector<8x64xf32>
    %cst_76 = arith.constant 0.000000e+00 : f32
    %110 = vector.broadcast %cst_76 : f32 to vector<8x64xf32>
    %111 = arith.cmpf ogt, %107, %110 : vector<8x64xf32>
    %cst_77 = arith.constant 1.000000e+00 : f32
    %cst_78 = arith.constant 0.000000e+00 : f32
    %112 = vector.broadcast %cst_77 : f32 to vector<8x64xf32>
    %113 = vector.broadcast %cst_78 : f32 to vector<8x64xf32>
    %114 = arith.select %111, %112, %113 : vector<8x64xi1>, vector<8x64xf32>
    %115 = arith.addf %101, %114 : vector<8x64xf32>
    %116 = vector.extract_strided_slice %96 {offsets = [0, 1], sizes = [8, 1], strides = [1, 1]} : vector<8x8xf32> to vector<8x1xf32>
    %117 = vector.broadcast %116 : vector<8x1xf32> to vector<8x64xf32>
    %118 = vector.broadcast %99 : vector<1x64xf32> to vector<8x64xf32>
    %119 = arith.subf %117, %118 : vector<8x64xf32>
    %cst_79 = arith.constant 0.000000e+00 : f32
    %120 = vector.broadcast %cst_79 : f32 to vector<8x64xf32>
    %121 = arith.maximumf %119, %120 : vector<8x64xf32>
    %122 = arith.mulf %121, %121 : vector<8x64xf32>
    %123 = arith.addf %109, %122 : vector<8x64xf32>
    %cst_80 = arith.constant 0.000000e+00 : f32
    %124 = vector.broadcast %cst_80 : f32 to vector<8x64xf32>
    %125 = arith.cmpf ogt, %121, %124 : vector<8x64xf32>
    %cst_81 = arith.constant 1.000000e+00 : f32
    %cst_82 = arith.constant 0.000000e+00 : f32
    %126 = vector.broadcast %cst_81 : f32 to vector<8x64xf32>
    %127 = vector.broadcast %cst_82 : f32 to vector<8x64xf32>
    %128 = arith.select %125, %126, %127 : vector<8x64xi1>, vector<8x64xf32>
    %129 = arith.addf %115, %128 : vector<8x64xf32>
    %130 = vector.extract_strided_slice %96 {offsets = [0, 2], sizes = [8, 1], strides = [1, 1]} : vector<8x8xf32> to vector<8x1xf32>
    %131 = vector.broadcast %130 : vector<8x1xf32> to vector<8x64xf32>
    %132 = vector.broadcast %99 : vector<1x64xf32> to vector<8x64xf32>
    %133 = arith.subf %131, %132 : vector<8x64xf32>
    %cst_83 = arith.constant 0.000000e+00 : f32
    %134 = vector.broadcast %cst_83 : f32 to vector<8x64xf32>
    %135 = arith.maximumf %133, %134 : vector<8x64xf32>
    %136 = arith.mulf %135, %135 : vector<8x64xf32>
    %137 = arith.addf %123, %136 : vector<8x64xf32>
    %cst_84 = arith.constant 0.000000e+00 : f32
    %138 = vector.broadcast %cst_84 : f32 to vector<8x64xf32>
    %139 = arith.cmpf ogt, %135, %138 : vector<8x64xf32>
    %cst_85 = arith.constant 1.000000e+00 : f32
    %cst_86 = arith.constant 0.000000e+00 : f32
    %140 = vector.broadcast %cst_85 : f32 to vector<8x64xf32>
    %141 = vector.broadcast %cst_86 : f32 to vector<8x64xf32>
    %142 = arith.select %139, %140, %141 : vector<8x64xi1>, vector<8x64xf32>
    %143 = arith.addf %129, %142 : vector<8x64xf32>
    %144 = vector.extract_strided_slice %96 {offsets = [0, 3], sizes = [8, 1], strides = [1, 1]} : vector<8x8xf32> to vector<8x1xf32>
    %145 = vector.broadcast %144 : vector<8x1xf32> to vector<8x64xf32>
    %146 = vector.broadcast %99 : vector<1x64xf32> to vector<8x64xf32>
    %147 = arith.subf %145, %146 : vector<8x64xf32>
    %cst_87 = arith.constant 0.000000e+00 : f32
    %148 = vector.broadcast %cst_87 : f32 to vector<8x64xf32>
    %149 = arith.maximumf %147, %148 : vector<8x64xf32>
    %150 = arith.mulf %149, %149 : vector<8x64xf32>
    %151 = arith.addf %137, %150 : vector<8x64xf32>
    %cst_88 = arith.constant 0.000000e+00 : f32
    %152 = vector.broadcast %cst_88 : f32 to vector<8x64xf32>
    %153 = arith.cmpf ogt, %149, %152 : vector<8x64xf32>
    %cst_89 = arith.constant 1.000000e+00 : f32
    %cst_90 = arith.constant 0.000000e+00 : f32
    %154 = vector.broadcast %cst_89 : f32 to vector<8x64xf32>
    %155 = vector.broadcast %cst_90 : f32 to vector<8x64xf32>
    %156 = arith.select %153, %154, %155 : vector<8x64xi1>, vector<8x64xf32>
    %157 = arith.addf %143, %156 : vector<8x64xf32>
    %158 = vector.extract_strided_slice %96 {offsets = [0, 4], sizes = [8, 1], strides = [1, 1]} : vector<8x8xf32> to vector<8x1xf32>
    %159 = vector.broadcast %158 : vector<8x1xf32> to vector<8x64xf32>
    %160 = vector.broadcast %99 : vector<1x64xf32> to vector<8x64xf32>
    %161 = arith.subf %159, %160 : vector<8x64xf32>
    %cst_91 = arith.constant 0.000000e+00 : f32
    %162 = vector.broadcast %cst_91 : f32 to vector<8x64xf32>
    %163 = arith.maximumf %161, %162 : vector<8x64xf32>
    %164 = arith.mulf %163, %163 : vector<8x64xf32>
    %165 = arith.addf %151, %164 : vector<8x64xf32>
    %cst_92 = arith.constant 0.000000e+00 : f32
    %166 = vector.broadcast %cst_92 : f32 to vector<8x64xf32>
    %167 = arith.cmpf ogt, %163, %166 : vector<8x64xf32>
    %cst_93 = arith.constant 1.000000e+00 : f32
    %cst_94 = arith.constant 0.000000e+00 : f32
    %168 = vector.broadcast %cst_93 : f32 to vector<8x64xf32>
    %169 = vector.broadcast %cst_94 : f32 to vector<8x64xf32>
    %170 = arith.select %167, %168, %169 : vector<8x64xi1>, vector<8x64xf32>
    %171 = arith.addf %157, %170 : vector<8x64xf32>
    %172 = vector.extract_strided_slice %96 {offsets = [0, 5], sizes = [8, 1], strides = [1, 1]} : vector<8x8xf32> to vector<8x1xf32>
    %173 = vector.broadcast %172 : vector<8x1xf32> to vector<8x64xf32>
    %174 = vector.broadcast %99 : vector<1x64xf32> to vector<8x64xf32>
    %175 = arith.subf %173, %174 : vector<8x64xf32>
    %cst_95 = arith.constant 0.000000e+00 : f32
    %176 = vector.broadcast %cst_95 : f32 to vector<8x64xf32>
    %177 = arith.maximumf %175, %176 : vector<8x64xf32>
    %178 = arith.mulf %177, %177 : vector<8x64xf32>
    %179 = arith.addf %165, %178 : vector<8x64xf32>
    %cst_96 = arith.constant 0.000000e+00 : f32
    %180 = vector.broadcast %cst_96 : f32 to vector<8x64xf32>
    %181 = arith.cmpf ogt, %177, %180 : vector<8x64xf32>
    %cst_97 = arith.constant 1.000000e+00 : f32
    %cst_98 = arith.constant 0.000000e+00 : f32
    %182 = vector.broadcast %cst_97 : f32 to vector<8x64xf32>
    %183 = vector.broadcast %cst_98 : f32 to vector<8x64xf32>
    %184 = arith.select %181, %182, %183 : vector<8x64xi1>, vector<8x64xf32>
    %185 = arith.addf %171, %184 : vector<8x64xf32>
    %186 = vector.extract_strided_slice %96 {offsets = [0, 6], sizes = [8, 1], strides = [1, 1]} : vector<8x8xf32> to vector<8x1xf32>
    %187 = vector.broadcast %186 : vector<8x1xf32> to vector<8x64xf32>
    %188 = vector.broadcast %99 : vector<1x64xf32> to vector<8x64xf32>
    %189 = arith.subf %187, %188 : vector<8x64xf32>
    %cst_99 = arith.constant 0.000000e+00 : f32
    %190 = vector.broadcast %cst_99 : f32 to vector<8x64xf32>
    %191 = arith.maximumf %189, %190 : vector<8x64xf32>
    %192 = arith.mulf %191, %191 : vector<8x64xf32>
    %193 = arith.addf %179, %192 : vector<8x64xf32>
    %cst_100 = arith.constant 0.000000e+00 : f32
    %194 = vector.broadcast %cst_100 : f32 to vector<8x64xf32>
    %195 = arith.cmpf ogt, %191, %194 : vector<8x64xf32>
    %cst_101 = arith.constant 1.000000e+00 : f32
    %cst_102 = arith.constant 0.000000e+00 : f32
    %196 = vector.broadcast %cst_101 : f32 to vector<8x64xf32>
    %197 = vector.broadcast %cst_102 : f32 to vector<8x64xf32>
    %198 = arith.select %195, %196, %197 : vector<8x64xi1>, vector<8x64xf32>
    %199 = arith.addf %185, %198 : vector<8x64xf32>
    %200 = vector.extract_strided_slice %96 {offsets = [0, 7], sizes = [8, 1], strides = [1, 1]} : vector<8x8xf32> to vector<8x1xf32>
    %201 = vector.broadcast %200 : vector<8x1xf32> to vector<8x64xf32>
    %202 = vector.broadcast %99 : vector<1x64xf32> to vector<8x64xf32>
    %203 = arith.subf %201, %202 : vector<8x64xf32>
    %cst_103 = arith.constant 0.000000e+00 : f32
    %204 = vector.broadcast %cst_103 : f32 to vector<8x64xf32>
    %205 = arith.maximumf %203, %204 : vector<8x64xf32>
    %206 = arith.mulf %205, %205 : vector<8x64xf32>
    %207 = arith.addf %193, %206 : vector<8x64xf32>
    %cst_104 = arith.constant 0.000000e+00 : f32
    %208 = vector.broadcast %cst_104 : f32 to vector<8x64xf32>
    %209 = arith.cmpf ogt, %205, %208 : vector<8x64xf32>
    %cst_105 = arith.constant 1.000000e+00 : f32
    %cst_106 = arith.constant 0.000000e+00 : f32
    %210 = vector.broadcast %cst_105 : f32 to vector<8x64xf32>
    %211 = vector.broadcast %cst_106 : f32 to vector<8x64xf32>
    %212 = arith.select %209, %210, %211 : vector<8x64xi1>, vector<8x64xf32>
    %213 = arith.addf %199, %212 : vector<8x64xf32>
    %214 = vector.broadcast %1 : vector<1x64xf32> to vector<8x64xf32>
    %215 = arith.mulf %207, %214 : vector<8x64xf32>
    %216 = vector.broadcast %1 : vector<1x64xf32> to vector<8x64xf32>
    %217 = arith.mulf %213, %216 : vector<8x64xf32>
    %cst_107 = arith.constant dense<0.000000e+00> : vector<8xf32>
    %218 = vector.multi_reduction <add>, %215, %cst_107 [1] : vector<8x64xf32> to vector<8xf32>
    %219 = vector.shape_cast %218 : vector<8xf32> to vector<8x1xf32>
    %cst_108 = arith.constant dense<0.000000e+00> : vector<1xf32>
    %220 = vector.multi_reduction <add>, %219, %cst_108 [0] : vector<8x1xf32> to vector<1xf32>
    %221 = vector.shape_cast %220 : vector<1xf32> to vector<1x1xf32>
    %cst_109 = arith.constant 8.000000e+01 : f32
    %222 = vector.broadcast %cst_109 : f32 to vector<1x1xf32>
    %223 = arith.mulf %221, %222 : vector<1x1xf32>
    %cst_110 = arith.constant dense<0.000000e+00> : vector<8xf32>
    %224 = vector.multi_reduction <add>, %217, %cst_110 [1] : vector<8x64xf32> to vector<8xf32>
    %225 = vector.shape_cast %224 : vector<8xf32> to vector<8x1xf32>
    %cst_111 = arith.constant dense<0.000000e+00> : vector<1xf32>
    %226 = vector.multi_reduction <add>, %225, %cst_111 [0] : vector<8x1xf32> to vector<1xf32>
    %227 = vector.shape_cast %226 : vector<1xf32> to vector<1x1xf32>
    %cst_112 = arith.constant 0.000000e+00 : f32
    %228 = vector.broadcast %cst_112 : f32 to vector<1x1xf32>
    %229 = arith.cmpf oeq, %227, %228 : vector<1x1xf32>
    %cst_113 = arith.constant 9.99999971E-10 : f32
    %230 = vector.broadcast %cst_113 : f32 to vector<1x1xf32>
    %231 = arith.addf %227, %230 : vector<1x1xf32>
    %232 = arith.divf %223, %231 : vector<1x1xf32>
    %cst_114 = arith.constant 0.000000e+00 : f32
    %233 = vector.broadcast %cst_114 : f32 to vector<1x1xf32>
    %234 = arith.select %229, %233, %232 : vector<1x1xi1>, vector<1x1xf32>
    %c0_i32 = arith.constant 0 : i32
    %235 = vector.broadcast %c0_i32 : i32 to vector<1x4xi32>
    %236 = arith.cmpi eq, %89, %235 : vector<1x4xi32>
    %237 = vector.shape_cast %234 : vector<1x1xf32> to vector<1x1xf32>
    %238 = vector.broadcast %237 : vector<1x1xf32> to vector<1x4xf32>
    %239 = arith.select %236, %238, %90 : vector<1x4xi1>, vector<1x4xf32>
    %240 = vector.shape_cast %227 : vector<1x1xf32> to vector<1x1xf32>
    %241 = vector.broadcast %240 : vector<1x1xf32> to vector<1x4xf32>
    %242 = arith.select %236, %241, %91 : vector<1x4xi1>, vector<1x4xf32>
    %243 = vector.extract_strided_slice %24 {offsets = [8, 8], sizes = [8, 8], strides = [1, 1]} : vector<32x32xf32> to vector<8x8xf32>
    %cst_115 = arith.constant 0.000000e+00 : f32
    %244 = vector.broadcast %cst_115 : f32 to vector<8x8xf32>
    %245 = arith.cmpf ogt, %0, %244 : vector<8x8xf32>
    %cst_116 = arith.constant -1.000000e+30 : f32
    %246 = vector.broadcast %cst_116 : f32 to vector<8x8xf32>
    %247 = arith.select %245, %243, %246 : vector<8x8xi1>, vector<8x8xf32>
    %c1_117 = arith.constant 1 : index
    %c0_118 = arith.constant 0 : index
    %248 = vector.load %arg6[%c1_117, %c0_118] : memref<4x64xf32, #tpu.memory_space<vmem>>, vector<1x64xf32>
    %cst_119 = arith.constant 2.000000e-01 : f32
    %249 = vector.broadcast %cst_119 : f32 to vector<1x64xf32>
    %250 = arith.subf %248, %249 : vector<1x64xf32>
    %cst_120 = arith.constant 0.000000e+00 : f32
    %251 = vector.broadcast %cst_120 : f32 to vector<8x64xf32>
    %cst_121 = arith.constant 0.000000e+00 : f32
    %252 = vector.broadcast %cst_121 : f32 to vector<8x64xf32>
    %253 = vector.extract_strided_slice %247 {offsets = [0, 0], sizes = [8, 1], strides = [1, 1]} : vector<8x8xf32> to vector<8x1xf32>
    %254 = vector.broadcast %253 : vector<8x1xf32> to vector<8x64xf32>
    %255 = vector.broadcast %250 : vector<1x64xf32> to vector<8x64xf32>
    %256 = arith.subf %254, %255 : vector<8x64xf32>
    %cst_122 = arith.constant 0.000000e+00 : f32
    %257 = vector.broadcast %cst_122 : f32 to vector<8x64xf32>
    %258 = arith.maximumf %256, %257 : vector<8x64xf32>
    %259 = arith.mulf %258, %258 : vector<8x64xf32>
    %260 = arith.addf %251, %259 : vector<8x64xf32>
    %cst_123 = arith.constant 0.000000e+00 : f32
    %261 = vector.broadcast %cst_123 : f32 to vector<8x64xf32>
    %262 = arith.cmpf ogt, %258, %261 : vector<8x64xf32>
    %cst_124 = arith.constant 1.000000e+00 : f32
    %cst_125 = arith.constant 0.000000e+00 : f32
    %263 = vector.broadcast %cst_124 : f32 to vector<8x64xf32>
    %264 = vector.broadcast %cst_125 : f32 to vector<8x64xf32>
    %265 = arith.select %262, %263, %264 : vector<8x64xi1>, vector<8x64xf32>
    %266 = arith.addf %252, %265 : vector<8x64xf32>
    %267 = vector.extract_strided_slice %247 {offsets = [0, 1], sizes = [8, 1], strides = [1, 1]} : vector<8x8xf32> to vector<8x1xf32>
    %268 = vector.broadcast %267 : vector<8x1xf32> to vector<8x64xf32>
    %269 = vector.broadcast %250 : vector<1x64xf32> to vector<8x64xf32>
    %270 = arith.subf %268, %269 : vector<8x64xf32>
    %cst_126 = arith.constant 0.000000e+00 : f32
    %271 = vector.broadcast %cst_126 : f32 to vector<8x64xf32>
    %272 = arith.maximumf %270, %271 : vector<8x64xf32>
    %273 = arith.mulf %272, %272 : vector<8x64xf32>
    %274 = arith.addf %260, %273 : vector<8x64xf32>
    %cst_127 = arith.constant 0.000000e+00 : f32
    %275 = vector.broadcast %cst_127 : f32 to vector<8x64xf32>
    %276 = arith.cmpf ogt, %272, %275 : vector<8x64xf32>
    %cst_128 = arith.constant 1.000000e+00 : f32
    %cst_129 = arith.constant 0.000000e+00 : f32
    %277 = vector.broadcast %cst_128 : f32 to vector<8x64xf32>
    %278 = vector.broadcast %cst_129 : f32 to vector<8x64xf32>
    %279 = arith.select %276, %277, %278 : vector<8x64xi1>, vector<8x64xf32>
    %280 = arith.addf %266, %279 : vector<8x64xf32>
    %281 = vector.extract_strided_slice %247 {offsets = [0, 2], sizes = [8, 1], strides = [1, 1]} : vector<8x8xf32> to vector<8x1xf32>
    %282 = vector.broadcast %281 : vector<8x1xf32> to vector<8x64xf32>
    %283 = vector.broadcast %250 : vector<1x64xf32> to vector<8x64xf32>
    %284 = arith.subf %282, %283 : vector<8x64xf32>
    %cst_130 = arith.constant 0.000000e+00 : f32
    %285 = vector.broadcast %cst_130 : f32 to vector<8x64xf32>
    %286 = arith.maximumf %284, %285 : vector<8x64xf32>
    %287 = arith.mulf %286, %286 : vector<8x64xf32>
    %288 = arith.addf %274, %287 : vector<8x64xf32>
    %cst_131 = arith.constant 0.000000e+00 : f32
    %289 = vector.broadcast %cst_131 : f32 to vector<8x64xf32>
    %290 = arith.cmpf ogt, %286, %289 : vector<8x64xf32>
    %cst_132 = arith.constant 1.000000e+00 : f32
    %cst_133 = arith.constant 0.000000e+00 : f32
    %291 = vector.broadcast %cst_132 : f32 to vector<8x64xf32>
    %292 = vector.broadcast %cst_133 : f32 to vector<8x64xf32>
    %293 = arith.select %290, %291, %292 : vector<8x64xi1>, vector<8x64xf32>
    %294 = arith.addf %280, %293 : vector<8x64xf32>
    %295 = vector.extract_strided_slice %247 {offsets = [0, 3], sizes = [8, 1], strides = [1, 1]} : vector<8x8xf32> to vector<8x1xf32>
    %296 = vector.broadcast %295 : vector<8x1xf32> to vector<8x64xf32>
    %297 = vector.broadcast %250 : vector<1x64xf32> to vector<8x64xf32>
    %298 = arith.subf %296, %297 : vector<8x64xf32>
    %cst_134 = arith.constant 0.000000e+00 : f32
    %299 = vector.broadcast %cst_134 : f32 to vector<8x64xf32>
    %300 = arith.maximumf %298, %299 : vector<8x64xf32>
    %301 = arith.mulf %300, %300 : vector<8x64xf32>
    %302 = arith.addf %288, %301 : vector<8x64xf32>
    %cst_135 = arith.constant 0.000000e+00 : f32
    %303 = vector.broadcast %cst_135 : f32 to vector<8x64xf32>
    %304 = arith.cmpf ogt, %300, %303 : vector<8x64xf32>
    %cst_136 = arith.constant 1.000000e+00 : f32
    %cst_137 = arith.constant 0.000000e+00 : f32
    %305 = vector.broadcast %cst_136 : f32 to vector<8x64xf32>
    %306 = vector.broadcast %cst_137 : f32 to vector<8x64xf32>
    %307 = arith.select %304, %305, %306 : vector<8x64xi1>, vector<8x64xf32>
    %308 = arith.addf %294, %307 : vector<8x64xf32>
    %309 = vector.extract_strided_slice %247 {offsets = [0, 4], sizes = [8, 1], strides = [1, 1]} : vector<8x8xf32> to vector<8x1xf32>
    %310 = vector.broadcast %309 : vector<8x1xf32> to vector<8x64xf32>
    %311 = vector.broadcast %250 : vector<1x64xf32> to vector<8x64xf32>
    %312 = arith.subf %310, %311 : vector<8x64xf32>
    %cst_138 = arith.constant 0.000000e+00 : f32
    %313 = vector.broadcast %cst_138 : f32 to vector<8x64xf32>
    %314 = arith.maximumf %312, %313 : vector<8x64xf32>
    %315 = arith.mulf %314, %314 : vector<8x64xf32>
    %316 = arith.addf %302, %315 : vector<8x64xf32>
    %cst_139 = arith.constant 0.000000e+00 : f32
    %317 = vector.broadcast %cst_139 : f32 to vector<8x64xf32>
    %318 = arith.cmpf ogt, %314, %317 : vector<8x64xf32>
    %cst_140 = arith.constant 1.000000e+00 : f32
    %cst_141 = arith.constant 0.000000e+00 : f32
    %319 = vector.broadcast %cst_140 : f32 to vector<8x64xf32>
    %320 = vector.broadcast %cst_141 : f32 to vector<8x64xf32>
    %321 = arith.select %318, %319, %320 : vector<8x64xi1>, vector<8x64xf32>
    %322 = arith.addf %308, %321 : vector<8x64xf32>
    %323 = vector.extract_strided_slice %247 {offsets = [0, 5], sizes = [8, 1], strides = [1, 1]} : vector<8x8xf32> to vector<8x1xf32>
    %324 = vector.broadcast %323 : vector<8x1xf32> to vector<8x64xf32>
    %325 = vector.broadcast %250 : vector<1x64xf32> to vector<8x64xf32>
    %326 = arith.subf %324, %325 : vector<8x64xf32>
    %cst_142 = arith.constant 0.000000e+00 : f32
    %327 = vector.broadcast %cst_142 : f32 to vector<8x64xf32>
    %328 = arith.maximumf %326, %327 : vector<8x64xf32>
    %329 = arith.mulf %328, %328 : vector<8x64xf32>
    %330 = arith.addf %316, %329 : vector<8x64xf32>
    %cst_143 = arith.constant 0.000000e+00 : f32
    %331 = vector.broadcast %cst_143 : f32 to vector<8x64xf32>
    %332 = arith.cmpf ogt, %328, %331 : vector<8x64xf32>
    %cst_144 = arith.constant 1.000000e+00 : f32
    %cst_145 = arith.constant 0.000000e+00 : f32
    %333 = vector.broadcast %cst_144 : f32 to vector<8x64xf32>
    %334 = vector.broadcast %cst_145 : f32 to vector<8x64xf32>
    %335 = arith.select %332, %333, %334 : vector<8x64xi1>, vector<8x64xf32>
    %336 = arith.addf %322, %335 : vector<8x64xf32>
    %337 = vector.extract_strided_slice %247 {offsets = [0, 6], sizes = [8, 1], strides = [1, 1]} : vector<8x8xf32> to vector<8x1xf32>
    %338 = vector.broadcast %337 : vector<8x1xf32> to vector<8x64xf32>
    %339 = vector.broadcast %250 : vector<1x64xf32> to vector<8x64xf32>
    %340 = arith.subf %338, %339 : vector<8x64xf32>
    %cst_146 = arith.constant 0.000000e+00 : f32
    %341 = vector.broadcast %cst_146 : f32 to vector<8x64xf32>
    %342 = arith.maximumf %340, %341 : vector<8x64xf32>
    %343 = arith.mulf %342, %342 : vector<8x64xf32>
    %344 = arith.addf %330, %343 : vector<8x64xf32>
    %cst_147 = arith.constant 0.000000e+00 : f32
    %345 = vector.broadcast %cst_147 : f32 to vector<8x64xf32>
    %346 = arith.cmpf ogt, %342, %345 : vector<8x64xf32>
    %cst_148 = arith.constant 1.000000e+00 : f32
    %cst_149 = arith.constant 0.000000e+00 : f32
    %347 = vector.broadcast %cst_148 : f32 to vector<8x64xf32>
    %348 = vector.broadcast %cst_149 : f32 to vector<8x64xf32>
    %349 = arith.select %346, %347, %348 : vector<8x64xi1>, vector<8x64xf32>
    %350 = arith.addf %336, %349 : vector<8x64xf32>
    %351 = vector.extract_strided_slice %247 {offsets = [0, 7], sizes = [8, 1], strides = [1, 1]} : vector<8x8xf32> to vector<8x1xf32>
    %352 = vector.broadcast %351 : vector<8x1xf32> to vector<8x64xf32>
    %353 = vector.broadcast %250 : vector<1x64xf32> to vector<8x64xf32>
    %354 = arith.subf %352, %353 : vector<8x64xf32>
    %cst_150 = arith.constant 0.000000e+00 : f32
    %355 = vector.broadcast %cst_150 : f32 to vector<8x64xf32>
    %356 = arith.maximumf %354, %355 : vector<8x64xf32>
    %357 = arith.mulf %356, %356 : vector<8x64xf32>
    %358 = arith.addf %344, %357 : vector<8x64xf32>
    %cst_151 = arith.constant 0.000000e+00 : f32
    %359 = vector.broadcast %cst_151 : f32 to vector<8x64xf32>
    %360 = arith.cmpf ogt, %356, %359 : vector<8x64xf32>
    %cst_152 = arith.constant 1.000000e+00 : f32
    %cst_153 = arith.constant 0.000000e+00 : f32
    %361 = vector.broadcast %cst_152 : f32 to vector<8x64xf32>
    %362 = vector.broadcast %cst_153 : f32 to vector<8x64xf32>
    %363 = arith.select %360, %361, %362 : vector<8x64xi1>, vector<8x64xf32>
    %364 = arith.addf %350, %363 : vector<8x64xf32>
    %365 = vector.broadcast %1 : vector<1x64xf32> to vector<8x64xf32>
    %366 = arith.mulf %358, %365 : vector<8x64xf32>
    %367 = vector.broadcast %1 : vector<1x64xf32> to vector<8x64xf32>
    %368 = arith.mulf %364, %367 : vector<8x64xf32>
    %cst_154 = arith.constant dense<0.000000e+00> : vector<8xf32>
    %369 = vector.multi_reduction <add>, %366, %cst_154 [1] : vector<8x64xf32> to vector<8xf32>
    %370 = vector.shape_cast %369 : vector<8xf32> to vector<8x1xf32>
    %cst_155 = arith.constant dense<0.000000e+00> : vector<1xf32>
    %371 = vector.multi_reduction <add>, %370, %cst_155 [0] : vector<8x1xf32> to vector<1xf32>
    %372 = vector.shape_cast %371 : vector<1xf32> to vector<1x1xf32>
    %cst_156 = arith.constant 8.000000e+01 : f32
    %373 = vector.broadcast %cst_156 : f32 to vector<1x1xf32>
    %374 = arith.mulf %372, %373 : vector<1x1xf32>
    %cst_157 = arith.constant dense<0.000000e+00> : vector<8xf32>
    %375 = vector.multi_reduction <add>, %368, %cst_157 [1] : vector<8x64xf32> to vector<8xf32>
    %376 = vector.shape_cast %375 : vector<8xf32> to vector<8x1xf32>
    %cst_158 = arith.constant dense<0.000000e+00> : vector<1xf32>
    %377 = vector.multi_reduction <add>, %376, %cst_158 [0] : vector<8x1xf32> to vector<1xf32>
    %378 = vector.shape_cast %377 : vector<1xf32> to vector<1x1xf32>
    %cst_159 = arith.constant 0.000000e+00 : f32
    %379 = vector.broadcast %cst_159 : f32 to vector<1x1xf32>
    %380 = arith.cmpf oeq, %378, %379 : vector<1x1xf32>
    %cst_160 = arith.constant 9.99999971E-10 : f32
    %381 = vector.broadcast %cst_160 : f32 to vector<1x1xf32>
    %382 = arith.addf %378, %381 : vector<1x1xf32>
    %383 = arith.divf %374, %382 : vector<1x1xf32>
    %cst_161 = arith.constant 0.000000e+00 : f32
    %384 = vector.broadcast %cst_161 : f32 to vector<1x1xf32>
    %385 = arith.select %380, %384, %383 : vector<1x1xi1>, vector<1x1xf32>
    %c1_i32 = arith.constant 1 : i32
    %386 = vector.broadcast %c1_i32 : i32 to vector<1x4xi32>
    %387 = arith.cmpi eq, %89, %386 : vector<1x4xi32>
    %388 = vector.shape_cast %385 : vector<1x1xf32> to vector<1x1xf32>
    %389 = vector.broadcast %388 : vector<1x1xf32> to vector<1x4xf32>
    %390 = arith.select %387, %389, %239 : vector<1x4xi1>, vector<1x4xf32>
    %391 = vector.shape_cast %378 : vector<1x1xf32> to vector<1x1xf32>
    %392 = vector.broadcast %391 : vector<1x1xf32> to vector<1x4xf32>
    %393 = arith.select %387, %392, %242 : vector<1x4xi1>, vector<1x4xf32>
    %394 = vector.extract_strided_slice %24 {offsets = [16, 16], sizes = [8, 8], strides = [1, 1]} : vector<32x32xf32> to vector<8x8xf32>
    %cst_162 = arith.constant 0.000000e+00 : f32
    %395 = vector.broadcast %cst_162 : f32 to vector<8x8xf32>
    %396 = arith.cmpf ogt, %0, %395 : vector<8x8xf32>
    %cst_163 = arith.constant -1.000000e+30 : f32
    %397 = vector.broadcast %cst_163 : f32 to vector<8x8xf32>
    %398 = arith.select %396, %394, %397 : vector<8x8xi1>, vector<8x8xf32>
    %c2_164 = arith.constant 2 : index
    %c0_165 = arith.constant 0 : index
    %399 = vector.load %arg6[%c2_164, %c0_165] : memref<4x64xf32, #tpu.memory_space<vmem>>, vector<1x64xf32>
    %cst_166 = arith.constant 2.000000e-01 : f32
    %400 = vector.broadcast %cst_166 : f32 to vector<1x64xf32>
    %401 = arith.subf %399, %400 : vector<1x64xf32>
    %cst_167 = arith.constant 0.000000e+00 : f32
    %402 = vector.broadcast %cst_167 : f32 to vector<8x64xf32>
    %cst_168 = arith.constant 0.000000e+00 : f32
    %403 = vector.broadcast %cst_168 : f32 to vector<8x64xf32>
    %404 = vector.extract_strided_slice %398 {offsets = [0, 0], sizes = [8, 1], strides = [1, 1]} : vector<8x8xf32> to vector<8x1xf32>
    %405 = vector.broadcast %404 : vector<8x1xf32> to vector<8x64xf32>
    %406 = vector.broadcast %401 : vector<1x64xf32> to vector<8x64xf32>
    %407 = arith.subf %405, %406 : vector<8x64xf32>
    %cst_169 = arith.constant 0.000000e+00 : f32
    %408 = vector.broadcast %cst_169 : f32 to vector<8x64xf32>
    %409 = arith.maximumf %407, %408 : vector<8x64xf32>
    %410 = arith.mulf %409, %409 : vector<8x64xf32>
    %411 = arith.addf %402, %410 : vector<8x64xf32>
    %cst_170 = arith.constant 0.000000e+00 : f32
    %412 = vector.broadcast %cst_170 : f32 to vector<8x64xf32>
    %413 = arith.cmpf ogt, %409, %412 : vector<8x64xf32>
    %cst_171 = arith.constant 1.000000e+00 : f32
    %cst_172 = arith.constant 0.000000e+00 : f32
    %414 = vector.broadcast %cst_171 : f32 to vector<8x64xf32>
    %415 = vector.broadcast %cst_172 : f32 to vector<8x64xf32>
    %416 = arith.select %413, %414, %415 : vector<8x64xi1>, vector<8x64xf32>
    %417 = arith.addf %403, %416 : vector<8x64xf32>
    %418 = vector.extract_strided_slice %398 {offsets = [0, 1], sizes = [8, 1], strides = [1, 1]} : vector<8x8xf32> to vector<8x1xf32>
    %419 = vector.broadcast %418 : vector<8x1xf32> to vector<8x64xf32>
    %420 = vector.broadcast %401 : vector<1x64xf32> to vector<8x64xf32>
    %421 = arith.subf %419, %420 : vector<8x64xf32>
    %cst_173 = arith.constant 0.000000e+00 : f32
    %422 = vector.broadcast %cst_173 : f32 to vector<8x64xf32>
    %423 = arith.maximumf %421, %422 : vector<8x64xf32>
    %424 = arith.mulf %423, %423 : vector<8x64xf32>
    %425 = arith.addf %411, %424 : vector<8x64xf32>
    %cst_174 = arith.constant 0.000000e+00 : f32
    %426 = vector.broadcast %cst_174 : f32 to vector<8x64xf32>
    %427 = arith.cmpf ogt, %423, %426 : vector<8x64xf32>
    %cst_175 = arith.constant 1.000000e+00 : f32
    %cst_176 = arith.constant 0.000000e+00 : f32
    %428 = vector.broadcast %cst_175 : f32 to vector<8x64xf32>
    %429 = vector.broadcast %cst_176 : f32 to vector<8x64xf32>
    %430 = arith.select %427, %428, %429 : vector<8x64xi1>, vector<8x64xf32>
    %431 = arith.addf %417, %430 : vector<8x64xf32>
    %432 = vector.extract_strided_slice %398 {offsets = [0, 2], sizes = [8, 1], strides = [1, 1]} : vector<8x8xf32> to vector<8x1xf32>
    %433 = vector.broadcast %432 : vector<8x1xf32> to vector<8x64xf32>
    %434 = vector.broadcast %401 : vector<1x64xf32> to vector<8x64xf32>
    %435 = arith.subf %433, %434 : vector<8x64xf32>
    %cst_177 = arith.constant 0.000000e+00 : f32
    %436 = vector.broadcast %cst_177 : f32 to vector<8x64xf32>
    %437 = arith.maximumf %435, %436 : vector<8x64xf32>
    %438 = arith.mulf %437, %437 : vector<8x64xf32>
    %439 = arith.addf %425, %438 : vector<8x64xf32>
    %cst_178 = arith.constant 0.000000e+00 : f32
    %440 = vector.broadcast %cst_178 : f32 to vector<8x64xf32>
    %441 = arith.cmpf ogt, %437, %440 : vector<8x64xf32>
    %cst_179 = arith.constant 1.000000e+00 : f32
    %cst_180 = arith.constant 0.000000e+00 : f32
    %442 = vector.broadcast %cst_179 : f32 to vector<8x64xf32>
    %443 = vector.broadcast %cst_180 : f32 to vector<8x64xf32>
    %444 = arith.select %441, %442, %443 : vector<8x64xi1>, vector<8x64xf32>
    %445 = arith.addf %431, %444 : vector<8x64xf32>
    %446 = vector.extract_strided_slice %398 {offsets = [0, 3], sizes = [8, 1], strides = [1, 1]} : vector<8x8xf32> to vector<8x1xf32>
    %447 = vector.broadcast %446 : vector<8x1xf32> to vector<8x64xf32>
    %448 = vector.broadcast %401 : vector<1x64xf32> to vector<8x64xf32>
    %449 = arith.subf %447, %448 : vector<8x64xf32>
    %cst_181 = arith.constant 0.000000e+00 : f32
    %450 = vector.broadcast %cst_181 : f32 to vector<8x64xf32>
    %451 = arith.maximumf %449, %450 : vector<8x64xf32>
    %452 = arith.mulf %451, %451 : vector<8x64xf32>
    %453 = arith.addf %439, %452 : vector<8x64xf32>
    %cst_182 = arith.constant 0.000000e+00 : f32
    %454 = vector.broadcast %cst_182 : f32 to vector<8x64xf32>
    %455 = arith.cmpf ogt, %451, %454 : vector<8x64xf32>
    %cst_183 = arith.constant 1.000000e+00 : f32
    %cst_184 = arith.constant 0.000000e+00 : f32
    %456 = vector.broadcast %cst_183 : f32 to vector<8x64xf32>
    %457 = vector.broadcast %cst_184 : f32 to vector<8x64xf32>
    %458 = arith.select %455, %456, %457 : vector<8x64xi1>, vector<8x64xf32>
    %459 = arith.addf %445, %458 : vector<8x64xf32>
    %460 = vector.extract_strided_slice %398 {offsets = [0, 4], sizes = [8, 1], strides = [1, 1]} : vector<8x8xf32> to vector<8x1xf32>
    %461 = vector.broadcast %460 : vector<8x1xf32> to vector<8x64xf32>
    %462 = vector.broadcast %401 : vector<1x64xf32> to vector<8x64xf32>
    %463 = arith.subf %461, %462 : vector<8x64xf32>
    %cst_185 = arith.constant 0.000000e+00 : f32
    %464 = vector.broadcast %cst_185 : f32 to vector<8x64xf32>
    %465 = arith.maximumf %463, %464 : vector<8x64xf32>
    %466 = arith.mulf %465, %465 : vector<8x64xf32>
    %467 = arith.addf %453, %466 : vector<8x64xf32>
    %cst_186 = arith.constant 0.000000e+00 : f32
    %468 = vector.broadcast %cst_186 : f32 to vector<8x64xf32>
    %469 = arith.cmpf ogt, %465, %468 : vector<8x64xf32>
    %cst_187 = arith.constant 1.000000e+00 : f32
    %cst_188 = arith.constant 0.000000e+00 : f32
    %470 = vector.broadcast %cst_187 : f32 to vector<8x64xf32>
    %471 = vector.broadcast %cst_188 : f32 to vector<8x64xf32>
    %472 = arith.select %469, %470, %471 : vector<8x64xi1>, vector<8x64xf32>
    %473 = arith.addf %459, %472 : vector<8x64xf32>
    %474 = vector.extract_strided_slice %398 {offsets = [0, 5], sizes = [8, 1], strides = [1, 1]} : vector<8x8xf32> to vector<8x1xf32>
    %475 = vector.broadcast %474 : vector<8x1xf32> to vector<8x64xf32>
    %476 = vector.broadcast %401 : vector<1x64xf32> to vector<8x64xf32>
    %477 = arith.subf %475, %476 : vector<8x64xf32>
    %cst_189 = arith.constant 0.000000e+00 : f32
    %478 = vector.broadcast %cst_189 : f32 to vector<8x64xf32>
    %479 = arith.maximumf %477, %478 : vector<8x64xf32>
    %480 = arith.mulf %479, %479 : vector<8x64xf32>
    %481 = arith.addf %467, %480 : vector<8x64xf32>
    %cst_190 = arith.constant 0.000000e+00 : f32
    %482 = vector.broadcast %cst_190 : f32 to vector<8x64xf32>
    %483 = arith.cmpf ogt, %479, %482 : vector<8x64xf32>
    %cst_191 = arith.constant 1.000000e+00 : f32
    %cst_192 = arith.constant 0.000000e+00 : f32
    %484 = vector.broadcast %cst_191 : f32 to vector<8x64xf32>
    %485 = vector.broadcast %cst_192 : f32 to vector<8x64xf32>
    %486 = arith.select %483, %484, %485 : vector<8x64xi1>, vector<8x64xf32>
    %487 = arith.addf %473, %486 : vector<8x64xf32>
    %488 = vector.extract_strided_slice %398 {offsets = [0, 6], sizes = [8, 1], strides = [1, 1]} : vector<8x8xf32> to vector<8x1xf32>
    %489 = vector.broadcast %488 : vector<8x1xf32> to vector<8x64xf32>
    %490 = vector.broadcast %401 : vector<1x64xf32> to vector<8x64xf32>
    %491 = arith.subf %489, %490 : vector<8x64xf32>
    %cst_193 = arith.constant 0.000000e+00 : f32
    %492 = vector.broadcast %cst_193 : f32 to vector<8x64xf32>
    %493 = arith.maximumf %491, %492 : vector<8x64xf32>
    %494 = arith.mulf %493, %493 : vector<8x64xf32>
    %495 = arith.addf %481, %494 : vector<8x64xf32>
    %cst_194 = arith.constant 0.000000e+00 : f32
    %496 = vector.broadcast %cst_194 : f32 to vector<8x64xf32>
    %497 = arith.cmpf ogt, %493, %496 : vector<8x64xf32>
    %cst_195 = arith.constant 1.000000e+00 : f32
    %cst_196 = arith.constant 0.000000e+00 : f32
    %498 = vector.broadcast %cst_195 : f32 to vector<8x64xf32>
    %499 = vector.broadcast %cst_196 : f32 to vector<8x64xf32>
    %500 = arith.select %497, %498, %499 : vector<8x64xi1>, vector<8x64xf32>
    %501 = arith.addf %487, %500 : vector<8x64xf32>
    %502 = vector.extract_strided_slice %398 {offsets = [0, 7], sizes = [8, 1], strides = [1, 1]} : vector<8x8xf32> to vector<8x1xf32>
    %503 = vector.broadcast %502 : vector<8x1xf32> to vector<8x64xf32>
    %504 = vector.broadcast %401 : vector<1x64xf32> to vector<8x64xf32>
    %505 = arith.subf %503, %504 : vector<8x64xf32>
    %cst_197 = arith.constant 0.000000e+00 : f32
    %506 = vector.broadcast %cst_197 : f32 to vector<8x64xf32>
    %507 = arith.maximumf %505, %506 : vector<8x64xf32>
    %508 = arith.mulf %507, %507 : vector<8x64xf32>
    %509 = arith.addf %495, %508 : vector<8x64xf32>
    %cst_198 = arith.constant 0.000000e+00 : f32
    %510 = vector.broadcast %cst_198 : f32 to vector<8x64xf32>
    %511 = arith.cmpf ogt, %507, %510 : vector<8x64xf32>
    %cst_199 = arith.constant 1.000000e+00 : f32
    %cst_200 = arith.constant 0.000000e+00 : f32
    %512 = vector.broadcast %cst_199 : f32 to vector<8x64xf32>
    %513 = vector.broadcast %cst_200 : f32 to vector<8x64xf32>
    %514 = arith.select %511, %512, %513 : vector<8x64xi1>, vector<8x64xf32>
    %515 = arith.addf %501, %514 : vector<8x64xf32>
    %516 = vector.broadcast %1 : vector<1x64xf32> to vector<8x64xf32>
    %517 = arith.mulf %509, %516 : vector<8x64xf32>
    %518 = vector.broadcast %1 : vector<1x64xf32> to vector<8x64xf32>
    %519 = arith.mulf %515, %518 : vector<8x64xf32>
    %cst_201 = arith.constant dense<0.000000e+00> : vector<8xf32>
    %520 = vector.multi_reduction <add>, %517, %cst_201 [1] : vector<8x64xf32> to vector<8xf32>
    %521 = vector.shape_cast %520 : vector<8xf32> to vector<8x1xf32>
    %cst_202 = arith.constant dense<0.000000e+00> : vector<1xf32>
    %522 = vector.multi_reduction <add>, %521, %cst_202 [0] : vector<8x1xf32> to vector<1xf32>
    %523 = vector.shape_cast %522 : vector<1xf32> to vector<1x1xf32>
    %cst_203 = arith.constant 8.000000e+01 : f32
    %524 = vector.broadcast %cst_203 : f32 to vector<1x1xf32>
    %525 = arith.mulf %523, %524 : vector<1x1xf32>
    %cst_204 = arith.constant dense<0.000000e+00> : vector<8xf32>
    %526 = vector.multi_reduction <add>, %519, %cst_204 [1] : vector<8x64xf32> to vector<8xf32>
    %527 = vector.shape_cast %526 : vector<8xf32> to vector<8x1xf32>
    %cst_205 = arith.constant dense<0.000000e+00> : vector<1xf32>
    %528 = vector.multi_reduction <add>, %527, %cst_205 [0] : vector<8x1xf32> to vector<1xf32>
    %529 = vector.shape_cast %528 : vector<1xf32> to vector<1x1xf32>
    %cst_206 = arith.constant 0.000000e+00 : f32
    %530 = vector.broadcast %cst_206 : f32 to vector<1x1xf32>
    %531 = arith.cmpf oeq, %529, %530 : vector<1x1xf32>
    %cst_207 = arith.constant 9.99999971E-10 : f32
    %532 = vector.broadcast %cst_207 : f32 to vector<1x1xf32>
    %533 = arith.addf %529, %532 : vector<1x1xf32>
    %534 = arith.divf %525, %533 : vector<1x1xf32>
    %cst_208 = arith.constant 0.000000e+00 : f32
    %535 = vector.broadcast %cst_208 : f32 to vector<1x1xf32>
    %536 = arith.select %531, %535, %534 : vector<1x1xi1>, vector<1x1xf32>
    %c2_i32 = arith.constant 2 : i32
    %537 = vector.broadcast %c2_i32 : i32 to vector<1x4xi32>
    %538 = arith.cmpi eq, %89, %537 : vector<1x4xi32>
    %539 = vector.shape_cast %536 : vector<1x1xf32> to vector<1x1xf32>
    %540 = vector.broadcast %539 : vector<1x1xf32> to vector<1x4xf32>
    %541 = arith.select %538, %540, %390 : vector<1x4xi1>, vector<1x4xf32>
    %542 = vector.shape_cast %529 : vector<1x1xf32> to vector<1x1xf32>
    %543 = vector.broadcast %542 : vector<1x1xf32> to vector<1x4xf32>
    %544 = arith.select %538, %543, %393 : vector<1x4xi1>, vector<1x4xf32>
    %545 = vector.extract_strided_slice %24 {offsets = [24, 24], sizes = [8, 8], strides = [1, 1]} : vector<32x32xf32> to vector<8x8xf32>
    %cst_209 = arith.constant 0.000000e+00 : f32
    %546 = vector.broadcast %cst_209 : f32 to vector<8x8xf32>
    %547 = arith.cmpf ogt, %0, %546 : vector<8x8xf32>
    %cst_210 = arith.constant -1.000000e+30 : f32
    %548 = vector.broadcast %cst_210 : f32 to vector<8x8xf32>
    %549 = arith.select %547, %545, %548 : vector<8x8xi1>, vector<8x8xf32>
    %c3_211 = arith.constant 3 : index
    %c0_212 = arith.constant 0 : index
    %550 = vector.load %arg6[%c3_211, %c0_212] : memref<4x64xf32, #tpu.memory_space<vmem>>, vector<1x64xf32>
    %cst_213 = arith.constant 2.000000e-01 : f32
    %551 = vector.broadcast %cst_213 : f32 to vector<1x64xf32>
    %552 = arith.subf %550, %551 : vector<1x64xf32>
    %cst_214 = arith.constant 0.000000e+00 : f32
    %553 = vector.broadcast %cst_214 : f32 to vector<8x64xf32>
    %cst_215 = arith.constant 0.000000e+00 : f32
    %554 = vector.broadcast %cst_215 : f32 to vector<8x64xf32>
    %555 = vector.extract_strided_slice %549 {offsets = [0, 0], sizes = [8, 1], strides = [1, 1]} : vector<8x8xf32> to vector<8x1xf32>
    %556 = vector.broadcast %555 : vector<8x1xf32> to vector<8x64xf32>
    %557 = vector.broadcast %552 : vector<1x64xf32> to vector<8x64xf32>
    %558 = arith.subf %556, %557 : vector<8x64xf32>
    %cst_216 = arith.constant 0.000000e+00 : f32
    %559 = vector.broadcast %cst_216 : f32 to vector<8x64xf32>
    %560 = arith.maximumf %558, %559 : vector<8x64xf32>
    %561 = arith.mulf %560, %560 : vector<8x64xf32>
    %562 = arith.addf %553, %561 : vector<8x64xf32>
    %cst_217 = arith.constant 0.000000e+00 : f32
    %563 = vector.broadcast %cst_217 : f32 to vector<8x64xf32>
    %564 = arith.cmpf ogt, %560, %563 : vector<8x64xf32>
    %cst_218 = arith.constant 1.000000e+00 : f32
    %cst_219 = arith.constant 0.000000e+00 : f32
    %565 = vector.broadcast %cst_218 : f32 to vector<8x64xf32>
    %566 = vector.broadcast %cst_219 : f32 to vector<8x64xf32>
    %567 = arith.select %564, %565, %566 : vector<8x64xi1>, vector<8x64xf32>
    %568 = arith.addf %554, %567 : vector<8x64xf32>
    %569 = vector.extract_strided_slice %549 {offsets = [0, 1], sizes = [8, 1], strides = [1, 1]} : vector<8x8xf32> to vector<8x1xf32>
    %570 = vector.broadcast %569 : vector<8x1xf32> to vector<8x64xf32>
    %571 = vector.broadcast %552 : vector<1x64xf32> to vector<8x64xf32>
    %572 = arith.subf %570, %571 : vector<8x64xf32>
    %cst_220 = arith.constant 0.000000e+00 : f32
    %573 = vector.broadcast %cst_220 : f32 to vector<8x64xf32>
    %574 = arith.maximumf %572, %573 : vector<8x64xf32>
    %575 = arith.mulf %574, %574 : vector<8x64xf32>
    %576 = arith.addf %562, %575 : vector<8x64xf32>
    %cst_221 = arith.constant 0.000000e+00 : f32
    %577 = vector.broadcast %cst_221 : f32 to vector<8x64xf32>
    %578 = arith.cmpf ogt, %574, %577 : vector<8x64xf32>
    %cst_222 = arith.constant 1.000000e+00 : f32
    %cst_223 = arith.constant 0.000000e+00 : f32
    %579 = vector.broadcast %cst_222 : f32 to vector<8x64xf32>
    %580 = vector.broadcast %cst_223 : f32 to vector<8x64xf32>
    %581 = arith.select %578, %579, %580 : vector<8x64xi1>, vector<8x64xf32>
    %582 = arith.addf %568, %581 : vector<8x64xf32>
    %583 = vector.extract_strided_slice %549 {offsets = [0, 2], sizes = [8, 1], strides = [1, 1]} : vector<8x8xf32> to vector<8x1xf32>
    %584 = vector.broadcast %583 : vector<8x1xf32> to vector<8x64xf32>
    %585 = vector.broadcast %552 : vector<1x64xf32> to vector<8x64xf32>
    %586 = arith.subf %584, %585 : vector<8x64xf32>
    %cst_224 = arith.constant 0.000000e+00 : f32
    %587 = vector.broadcast %cst_224 : f32 to vector<8x64xf32>
    %588 = arith.maximumf %586, %587 : vector<8x64xf32>
    %589 = arith.mulf %588, %588 : vector<8x64xf32>
    %590 = arith.addf %576, %589 : vector<8x64xf32>
    %cst_225 = arith.constant 0.000000e+00 : f32
    %591 = vector.broadcast %cst_225 : f32 to vector<8x64xf32>
    %592 = arith.cmpf ogt, %588, %591 : vector<8x64xf32>
    %cst_226 = arith.constant 1.000000e+00 : f32
    %cst_227 = arith.constant 0.000000e+00 : f32
    %593 = vector.broadcast %cst_226 : f32 to vector<8x64xf32>
    %594 = vector.broadcast %cst_227 : f32 to vector<8x64xf32>
    %595 = arith.select %592, %593, %594 : vector<8x64xi1>, vector<8x64xf32>
    %596 = arith.addf %582, %595 : vector<8x64xf32>
    %597 = vector.extract_strided_slice %549 {offsets = [0, 3], sizes = [8, 1], strides = [1, 1]} : vector<8x8xf32> to vector<8x1xf32>
    %598 = vector.broadcast %597 : vector<8x1xf32> to vector<8x64xf32>
    %599 = vector.broadcast %552 : vector<1x64xf32> to vector<8x64xf32>
    %600 = arith.subf %598, %599 : vector<8x64xf32>
    %cst_228 = arith.constant 0.000000e+00 : f32
    %601 = vector.broadcast %cst_228 : f32 to vector<8x64xf32>
    %602 = arith.maximumf %600, %601 : vector<8x64xf32>
    %603 = arith.mulf %602, %602 : vector<8x64xf32>
    %604 = arith.addf %590, %603 : vector<8x64xf32>
    %cst_229 = arith.constant 0.000000e+00 : f32
    %605 = vector.broadcast %cst_229 : f32 to vector<8x64xf32>
    %606 = arith.cmpf ogt, %602, %605 : vector<8x64xf32>
    %cst_230 = arith.constant 1.000000e+00 : f32
    %cst_231 = arith.constant 0.000000e+00 : f32
    %607 = vector.broadcast %cst_230 : f32 to vector<8x64xf32>
    %608 = vector.broadcast %cst_231 : f32 to vector<8x64xf32>
    %609 = arith.select %606, %607, %608 : vector<8x64xi1>, vector<8x64xf32>
    %610 = arith.addf %596, %609 : vector<8x64xf32>
    %611 = vector.extract_strided_slice %549 {offsets = [0, 4], sizes = [8, 1], strides = [1, 1]} : vector<8x8xf32> to vector<8x1xf32>
    %612 = vector.broadcast %611 : vector<8x1xf32> to vector<8x64xf32>
    %613 = vector.broadcast %552 : vector<1x64xf32> to vector<8x64xf32>
    %614 = arith.subf %612, %613 : vector<8x64xf32>
    %cst_232 = arith.constant 0.000000e+00 : f32
    %615 = vector.broadcast %cst_232 : f32 to vector<8x64xf32>
    %616 = arith.maximumf %614, %615 : vector<8x64xf32>
    %617 = arith.mulf %616, %616 : vector<8x64xf32>
    %618 = arith.addf %604, %617 : vector<8x64xf32>
    %cst_233 = arith.constant 0.000000e+00 : f32
    %619 = vector.broadcast %cst_233 : f32 to vector<8x64xf32>
    %620 = arith.cmpf ogt, %616, %619 : vector<8x64xf32>
    %cst_234 = arith.constant 1.000000e+00 : f32
    %cst_235 = arith.constant 0.000000e+00 : f32
    %621 = vector.broadcast %cst_234 : f32 to vector<8x64xf32>
    %622 = vector.broadcast %cst_235 : f32 to vector<8x64xf32>
    %623 = arith.select %620, %621, %622 : vector<8x64xi1>, vector<8x64xf32>
    %624 = arith.addf %610, %623 : vector<8x64xf32>
    %625 = vector.extract_strided_slice %549 {offsets = [0, 5], sizes = [8, 1], strides = [1, 1]} : vector<8x8xf32> to vector<8x1xf32>
    %626 = vector.broadcast %625 : vector<8x1xf32> to vector<8x64xf32>
    %627 = vector.broadcast %552 : vector<1x64xf32> to vector<8x64xf32>
    %628 = arith.subf %626, %627 : vector<8x64xf32>
    %cst_236 = arith.constant 0.000000e+00 : f32
    %629 = vector.broadcast %cst_236 : f32 to vector<8x64xf32>
    %630 = arith.maximumf %628, %629 : vector<8x64xf32>
    %631 = arith.mulf %630, %630 : vector<8x64xf32>
    %632 = arith.addf %618, %631 : vector<8x64xf32>
    %cst_237 = arith.constant 0.000000e+00 : f32
    %633 = vector.broadcast %cst_237 : f32 to vector<8x64xf32>
    %634 = arith.cmpf ogt, %630, %633 : vector<8x64xf32>
    %cst_238 = arith.constant 1.000000e+00 : f32
    %cst_239 = arith.constant 0.000000e+00 : f32
    %635 = vector.broadcast %cst_238 : f32 to vector<8x64xf32>
    %636 = vector.broadcast %cst_239 : f32 to vector<8x64xf32>
    %637 = arith.select %634, %635, %636 : vector<8x64xi1>, vector<8x64xf32>
    %638 = arith.addf %624, %637 : vector<8x64xf32>
    %639 = vector.extract_strided_slice %549 {offsets = [0, 6], sizes = [8, 1], strides = [1, 1]} : vector<8x8xf32> to vector<8x1xf32>
    %640 = vector.broadcast %639 : vector<8x1xf32> to vector<8x64xf32>
    %641 = vector.broadcast %552 : vector<1x64xf32> to vector<8x64xf32>
    %642 = arith.subf %640, %641 : vector<8x64xf32>
    %cst_240 = arith.constant 0.000000e+00 : f32
    %643 = vector.broadcast %cst_240 : f32 to vector<8x64xf32>
    %644 = arith.maximumf %642, %643 : vector<8x64xf32>
    %645 = arith.mulf %644, %644 : vector<8x64xf32>
    %646 = arith.addf %632, %645 : vector<8x64xf32>
    %cst_241 = arith.constant 0.000000e+00 : f32
    %647 = vector.broadcast %cst_241 : f32 to vector<8x64xf32>
    %648 = arith.cmpf ogt, %644, %647 : vector<8x64xf32>
    %cst_242 = arith.constant 1.000000e+00 : f32
    %cst_243 = arith.constant 0.000000e+00 : f32
    %649 = vector.broadcast %cst_242 : f32 to vector<8x64xf32>
    %650 = vector.broadcast %cst_243 : f32 to vector<8x64xf32>
    %651 = arith.select %648, %649, %650 : vector<8x64xi1>, vector<8x64xf32>
    %652 = arith.addf %638, %651 : vector<8x64xf32>
    %653 = vector.extract_strided_slice %549 {offsets = [0, 7], sizes = [8, 1], strides = [1, 1]} : vector<8x8xf32> to vector<8x1xf32>
    %654 = vector.broadcast %653 : vector<8x1xf32> to vector<8x64xf32>
    %655 = vector.broadcast %552 : vector<1x64xf32> to vector<8x64xf32>
    %656 = arith.subf %654, %655 : vector<8x64xf32>
    %cst_244 = arith.constant 0.000000e+00 : f32
    %657 = vector.broadcast %cst_244 : f32 to vector<8x64xf32>
    %658 = arith.maximumf %656, %657 : vector<8x64xf32>
    %659 = arith.mulf %658, %658 : vector<8x64xf32>
    %660 = arith.addf %646, %659 : vector<8x64xf32>
    %cst_245 = arith.constant 0.000000e+00 : f32
    %661 = vector.broadcast %cst_245 : f32 to vector<8x64xf32>
    %662 = arith.cmpf ogt, %658, %661 : vector<8x64xf32>
    %cst_246 = arith.constant 1.000000e+00 : f32
    %cst_247 = arith.constant 0.000000e+00 : f32
    %663 = vector.broadcast %cst_246 : f32 to vector<8x64xf32>
    %664 = vector.broadcast %cst_247 : f32 to vector<8x64xf32>
    %665 = arith.select %662, %663, %664 : vector<8x64xi1>, vector<8x64xf32>
    %666 = arith.addf %652, %665 : vector<8x64xf32>
    %667 = vector.broadcast %1 : vector<1x64xf32> to vector<8x64xf32>
    %668 = arith.mulf %660, %667 : vector<8x64xf32>
    %669 = vector.broadcast %1 : vector<1x64xf32> to vector<8x64xf32>
    %670 = arith.mulf %666, %669 : vector<8x64xf32>
    %cst_248 = arith.constant dense<0.000000e+00> : vector<8xf32>
    %671 = vector.multi_reduction <add>, %668, %cst_248 [1] : vector<8x64xf32> to vector<8xf32>
    %672 = vector.shape_cast %671 : vector<8xf32> to vector<8x1xf32>
    %cst_249 = arith.constant dense<0.000000e+00> : vector<1xf32>
    %673 = vector.multi_reduction <add>, %672, %cst_249 [0] : vector<8x1xf32> to vector<1xf32>
    %674 = vector.shape_cast %673 : vector<1xf32> to vector<1x1xf32>
    %cst_250 = arith.constant 8.000000e+01 : f32
    %675 = vector.broadcast %cst_250 : f32 to vector<1x1xf32>
    %676 = arith.mulf %674, %675 : vector<1x1xf32>
    %cst_251 = arith.constant dense<0.000000e+00> : vector<8xf32>
    %677 = vector.multi_reduction <add>, %670, %cst_251 [1] : vector<8x64xf32> to vector<8xf32>
    %678 = vector.shape_cast %677 : vector<8xf32> to vector<8x1xf32>
    %cst_252 = arith.constant dense<0.000000e+00> : vector<1xf32>
    %679 = vector.multi_reduction <add>, %678, %cst_252 [0] : vector<8x1xf32> to vector<1xf32>
    %680 = vector.shape_cast %679 : vector<1xf32> to vector<1x1xf32>
    %cst_253 = arith.constant 0.000000e+00 : f32
    %681 = vector.broadcast %cst_253 : f32 to vector<1x1xf32>
    %682 = arith.cmpf oeq, %680, %681 : vector<1x1xf32>
    %cst_254 = arith.constant 9.99999971E-10 : f32
    %683 = vector.broadcast %cst_254 : f32 to vector<1x1xf32>
    %684 = arith.addf %680, %683 : vector<1x1xf32>
    %685 = arith.divf %676, %684 : vector<1x1xf32>
    %cst_255 = arith.constant 0.000000e+00 : f32
    %686 = vector.broadcast %cst_255 : f32 to vector<1x1xf32>
    %687 = arith.select %682, %686, %685 : vector<1x1xi1>, vector<1x1xf32>
    %c3_i32 = arith.constant 3 : i32
    %688 = vector.broadcast %c3_i32 : i32 to vector<1x4xi32>
    %689 = arith.cmpi eq, %89, %688 : vector<1x4xi32>
    %690 = vector.shape_cast %687 : vector<1x1xf32> to vector<1x1xf32>
    %691 = vector.broadcast %690 : vector<1x1xf32> to vector<1x4xf32>
    %692 = arith.select %689, %691, %541 : vector<1x4xi1>, vector<1x4xf32>
    %693 = vector.shape_cast %680 : vector<1x1xf32> to vector<1x1xf32>
    %694 = vector.broadcast %693 : vector<1x1xf32> to vector<1x4xf32>
    %695 = arith.select %689, %694, %544 : vector<1x4xi1>, vector<1x4xf32>
    %c0_256 = arith.constant 0 : index
    %c0_257 = arith.constant 0 : index
    %c0_258 = arith.constant 0 : index
    %696 = vector.load %arg4[%c0_256, %c0_257, %c0_258] : memref<1x1x4xf32, #tpu.memory_space<vmem>>, vector<1x1x4xf32>
    %697 = vector.shape_cast %696 : vector<1x1x4xf32> to vector<1x4xf32>
    %698 = vector.shape_cast %692 : vector<1x4xf32> to vector<1x1x4xf32>
    tpu.vector_store %arg4[%c0_256, %c0_257, %c0_258], %698 {strides = array<i32>} : memref<1x1x4xf32, #tpu.memory_space<vmem>>, vector<1x1x4xf32>,
    %c0_259 = arith.constant 0 : index
    %c0_260 = arith.constant 0 : index
    %c0_261 = arith.constant 0 : index
    %699 = vector.load %arg5[%c0_259, %c0_260, %c0_261] : memref<1x1x4xf32, #tpu.memory_space<vmem>>, vector<1x1x4xf32>
    %700 = vector.shape_cast %699 : vector<1x1x4xf32> to vector<1x4xf32>
    %701 = vector.shape_cast %695 : vector<1x4xf32> to vector<1x1x4xf32>
    tpu.vector_store %arg5[%c0_259, %c0_260, %c0_261], %701 {strides = array<i32>} : memref<1x1x4xf32, #tpu.memory_space<vmem>>, vector<1x1x4xf32>,
    return
  }
  func.func @transform_0(%arg0: i32) -> (i32, i32, i32) {
    %c0_i32 = arith.constant 0 : i32
    %c0_i32_0 = arith.constant 0 : i32
    %c0_i32_1 = arith.constant 0 : i32
    return %arg0, %c0_i32, %c0_i32_0 : i32, i32, i32
  }
  func.func @transform_1(%arg0: i32) -> (i32, i32) {
    %c0_i32 = arith.constant 0 : i32
    %c0_i32_0 = arith.constant 0 : i32
    %c0_i32_1 = arith.constant 0 : i32
    return %c0_i32, %c0_i32_0 : i32, i32
  }
  func.func @transform_2(%arg0: i32) -> (i32, i32) {
    %c0_i32 = arith.constant 0 : i32
    %c0_i32_0 = arith.constant 0 : i32
    %c0_i32_1 = arith.constant 0 : i32
    return %c0_i32, %c0_i32_0 : i32, i32
  }
  func.func @transform_3(%arg0: i32) -> (i32, i32, i32) {
    %c0_i32 = arith.constant 0 : i32
    %c0_i32_0 = arith.constant 0 : i32
    %c0_i32_1 = arith.constant 0 : i32
    return %arg0, %c0_i32, %c0_i32_0 : i32, i32, i32
  }
  func.func @transform_4(%arg0: i32) -> (i32, i32, i32) {
    %c0_i32 = arith.constant 0 : i32
    %c0_i32_0 = arith.constant 0 : i32
    %c0_i32_1 = arith.constant 0 : i32
    return %arg0, %c0_i32, %c0_i32_0 : i32, i32, i32
  }
}

</mosaic_0001>

<bundles_post_ra>
// kernel: tpu_custom_call.1
= control target key start
LH: loop header
LB: loop body
LE: loop exit
PB: predicated region body
PF: predicated region fallthrough
CT: control target
= control target key end

     0   :  { %10 = vsyncpa [#allocation4], 0  ;;  %vm24_vm0 = vcmask 130048   ;;  %s1380_s0 = inlined_call_operand.vmem [shape: f32[1,32,16], index: 0, kind: input, shape index: {}]   ;;  %s1381_s1 = inlined_call_operand.vmem [shape: f32[8,8], index: 1, kind: input, shape index: {}]   ;;  %s1382_s2 = inlined_call_operand.vmem [shape: f32[1,64], index: 2, kind: input, shape index: {}]   ;;  %s1383_s3 = inlined_call_operand.hbm [shape: f32[1,1,4], index: 3, kind: output, shape index: {0}]   ;;  %s1384_s4 = inlined_call_operand.hbm [shape: f32[1,1,4], index: 4, kind: output, shape index: {1}]  }
   0x1   :  { %v23_v0 = vld [vmem:[%s1380_s0 + $0x18] sm:$0xff]  ;;  %v22_v1 = vld [vmem:[%s1380_s0 + $0x10] sm:$0xff] }
   0x2   :  { %895 = vmatprep.subr.msk.mxu0 %vm24_vm0, %v23_v0  ;;  %909 = vmatprep.subr.msk.mxu1 %vm24_vm0, %v23_v0 }
   0x3   :  { %11 = vsyncpa [#allocation6], 0  ;;  %896 = vmatpush3.xpose.msk.msra.mxu0 %vm24_vm0, %v23_v0  ;;  %913 = vmatpush3.xpose.msk.msra.mxu1 %vm24_vm0, %v23_v0  ;;  %v20_v2 = vld [vmem:[%s1380_s0] sm:$0xff]  ;;  %v21_v3 = vld [vmem:[%s1380_s0 + $0x8] sm:$0xff]  ;;  %v122_v4 = vlaneseq  ;;  %vm137_vm3 = vcmask 261120   ;;  %v1029_v25 = vmov 0  }
   0x4   :  { %897 = vmatprep.subr.msk.mxu0 %vm24_vm0, %v22_v1  ;;  %910 = vmatprep.subr.msk.mxu1 %vm24_vm0, %v22_v1  ;;  %v1030_v26 = vmov 1   ;;  %s1031_s0 = smov 8   ;;  %s1032_s23 = smov 120   ;;  %vm207_vm9 = vcmask 57344  }
   0x5   :  { %903 = vmatprep.mubr.msk.f32.mxu0 %vm24_vm0, %v20_v2  ;;  %906 = vmatprep.mubr.msk.f32.mxu1 %vm24_vm0, %v22_v1  ;;  %v1107_v5 = vshrl.u32 %v122_v4, 7  ;;  %v1109_v6 = vand.u32 127, %v122_v4  ;;  %s1033_s24 = smov 24   ;;  %s1034_s25 = smov 16  }
   0x6   :  { %938 = vset.pattern.permute.xlu0 %v1029_v25  ;;  %939 = vset.pattern.permute.xlu1 %v1030_v26  ;;  %s1035_s26 = smov 40   ;;  %s1036_s27 = smov 32  }
   0x7   :  { %898 = vmatpush3.xpose.msk.msra.mxu0 %vm24_vm0, %v22_v1  ;;  %914 = vmatpush3.xpose.msk.msra.mxu1 %vm24_vm0, %v22_v1  ;;  %v126_v7 = vadd.s32 24, %v1107_v5  ;;  %v124_v8 = vadd.s32 8, %v1107_v5  ;;  %v125_v9 = vadd.s32 16, %v1107_v5  ;;  %vm129_vm4 = vcmp.eq.s32.totalorder %v1107_v5, %v1109_v6  ;;  %s1037_s28 = smov 112   ;;  %s1038_s29 = smov 48  }
   0x8   :  { %899 = vmatprep.subr.msk.mxu0 %vm24_vm0, %v21_v3  ;;  %911 = vmatprep.subr.msk.mxu1 %vm24_vm0, %v21_v3  ;;  %s1039_s30 = smov 104   ;;  %s1040_s5 = smov 56  }
   0x9   :  { %vm132_vm1 = vcmp.eq.s32.totalorder %v126_v7, %v1109_v6  ;;  %vm130_vm2 = vcmp.eq.s32.totalorder %v124_v8, %v1109_v6  ;;  %vm131_vm5 = vcmp.eq.s32.totalorder %v125_v9, %v1109_v6 }
   0xb   :  { %900 = vmatpush3.xpose.msk.msra.mxu0 %vm24_vm0, %v21_v3  ;;  %915 = vmatpush3.xpose.msk.msra.mxu1 %vm24_vm0, %v21_v3 }
   0xc   :  { %901 = vmatprep.subr.msk.mxu0 %vm24_vm0, %v20_v2  ;;  %912 = vmatprep.subr.msk.mxu1 %vm24_vm0, %v20_v2 }
   0xf   :  { %902 = vmatpush3.xpose.msk.msra.mxu0 %vm24_vm0, %v20_v2  ;;  %916 = vmatpush3.xpose.msk.msra.mxu1 %vm24_vm0, %v20_v2 }
  0x12   :  { %904 = vmatmul.mubr.msk.f32.vlgmr.msra.gmra.mxu0 %vm24_vm0, %v21_v3  ;;  %907 = vmatmul.mubr.msk.f32.vlgmr.msra.gmra.mxu1 %vm24_vm0, %v23_v0  ;;  %vm213_vm0 = vcmask 123969  }
  0xd2   :  { %v905_v10 = vpop.f32.mrf.mxu0  ;;  %v908_v11 = vpop.f32.mrf.mxu1 }
  0xd3   :  { %v136_v12 = vsel %vm132_vm1, %v908_v11, 0.0  ;;  %v134_v13 = vsel %vm130_vm2, %v905_v10, 0.0  ;;  %v164_v35 = vmul.f32 2.0, %v905_v10  ;;  %v166_v36 = vmul.f32 2.0, %v908_v11 }
  0xd4   :  { %v103_v14 = vpop.f32.mrf.mxu0  ;;  %v147_v15 = vsel %vm137_vm3, %v136_v12, 0.0  ;;  %v141_v16 = vsel %vm137_vm3, %v134_v13, 0.0  ;;  %v113_v17 = vpop.f32.mrf.mxu1  ;;  %vm218_vm1 = vcmask 190594   ;;  %vm223_vm2 = vcmask 257219  }
  0xd5   :  { %v133_v18 = vsel %vm129_vm4, %v103_v14, 0.0  ;;  %148 = vadd.xlane.f32.xlu1 %v147_v15  ;;  %142 = vadd.xlane.f32.xlu0 %v141_v16  ;;  %v135_v19 = vsel %vm131_vm5, %v113_v17, 0.0  ;;  %v163_v41 = vmul.f32 2.0, %v103_v14  ;;  %v165_v44 = vmul.f32 2.0, %v113_v17 }
  0xd6   :  { %v144_v20 = vsel %vm137_vm3, %v135_v19, 0.0  ;;  %v138_v21 = vsel %vm137_vm3, %v133_v18, 0.0  ;;  %v1041_v17 = vmov 3   ;;  %v1042_v18 = vmov 6  }
  0xd7   :  { %v150_v22 = vadd.f32 %v141_v16, %v138_v21  ;;  %v1043_v19 = vmov 2   ;;  %vm228_vm3 = vcmask 323844   ;;  %vm233_vm4 = vcmask 390469  }
  0xd8   :  { %vm238_vm5 = vcmask 457094  }
  0xd9   :  { %145 = vadd.xlane.f32.xlu0 %v144_v20  ;;  %139 = vadd.xlane.f32.xlu1 %v138_v21  ;;  %v151_v23 = vadd.f32 %v150_v22, %v144_v20  ;;  %v1044_v20 = vmov 4   ;;  %v1045_v21 = vmov 5   ;;  %v1046_v22 = vmov 7  }
  0xdb   :  { %v152_v24 = vadd.f32 %v151_v23, %v147_v15  ;;  %v1170_v15 = vld [vmem:[%s1381_s1] sm:$0xff] }
  0xdc   :  { %vm335_vm15 = vcmp.gt.f32.partialorder %v1170_v15, 0.0 }
  0xdd   :  { %v153_v27 = vrot.slane %v152_v24, 4 }
  0xdf   :  { %v154_v28 = vadd.f32 %v153_v27, %v152_v24 }
  0xe1   :  { %v155_v29 = vrot.slane %v154_v28, 2 }
  0xe3   :  { %v156_v30 = vadd.f32 %v155_v29, %v154_v28 }
  0xe5   :  { %v157_v31 = vrot.slane %v156_v30, 1 }
  0xe7   :  { %v158_v32 = vadd.f32 %v157_v31, %v156_v30 }
 0x15e   :  { %v149_v33 = vpop.xlane.xlu1 %148  ;;  %v143_v34 = vpop.xlane.xlu0 %142 }
 0x15f   :  { %v162_v37 = vadd.f32 %v158_v32, %v149_v33  ;;  %v160_v38 = vadd.f32 %v158_v32, %v143_v34 }
 0x161   :  { %v170_v39 = vsub.f32 %v162_v37, %v166_v36  ;;  %v168_v40 = vsub.f32 %v160_v38, %v164_v35 }
 0x162   :  { %v146_v42 = vpop.xlane.xlu0 %145  ;;  %v140_v43 = vpop.xlane.xlu1 %139 }
 0x163   :  { %v172_v45 = vmax.f32 %v168_v40, 0.0  ;;  %v161_v46 = vadd.f32 %v158_v32, %v146_v42  ;;  %v159_v47 = vadd.f32 %v158_v32, %v140_v43  ;;  %v174_v51 = vmax.f32 %v170_v39, 0.0 }
 0x165   :  { %v176_v48 = vadd.f32 1e-09, %v172_v45  ;;  %v169_v49 = vsub.f32 %v161_v46, %v165_v44  ;;  %v167_v50 = vsub.f32 %v159_v47, %v163_v41  ;;  %v178_v54 = vadd.f32 1e-09, %v174_v51 }
 0x167   :  { %v171_v52 = vmax.f32 %v167_v50, 0.0  ;;  %969 = vrsqrt.f32 %v176_v48  ;;  %vm188_vm6 = vcmp.eq.f32.partialorder %v176_v48, inf  ;;  %v191_v57 = vand.u32 2147483648, %v176_v48 }
 0x168   :  { %vm190_vm7 = vcmp.eq.f32.partialorder %v176_v48, 0.0  ;;  %v173_v3 = vmax.f32 %v169_v49, 0.0  ;;  %vm202_vm11 = vcmp.eq.f32.partialorder %v178_v54, inf  ;;  %v205_v8 = vand.u32 2147483648, %v178_v54 }
 0x169   :  { %v175_v53 = vadd.f32 1e-09, %v171_v52  ;;  %vm204_vm12 = vcmp.eq.f32.partialorder %v178_v54, 0.0 }
 0x16a   :  { %v177_v4 = vadd.f32 1e-09, %v173_v3  ;;  %v1047_v3 = vmov 0.0  }
 0x16b   :  { %971 = vrsqrt.f32 %v175_v53  ;;  %vm181_vm8 = vcmp.eq.f32.partialorder %v175_v53, inf  ;;  %v184_v63 = vand.u32 2147483648, %v175_v53  ;;  %vm183_vm10 = vcmp.eq.f32.partialorder %v175_v53, 0.0 }
 0x16c   :  { %973 = vrsqrt.f32 %v178_v54  ;;  %vm195_vm13 = vcmp.eq.f32.partialorder %v177_v4, inf  ;;  %v198_v13 = vand.u32 2147483648, %v177_v4  ;;  %vm197_vm14 = vcmp.eq.f32.partialorder %v177_v4, 0.0 }
 0x16d   :  { %975 = vrsqrt.f32 %v177_v4 }
 0x174   :  { %v970_v55 = vpop.eup %969 }
 0x175   :  { %v187_v56 = vmul.f32 %v970_v55, %v176_v48 }
 0x177   :  { %v189_v58 = vsel %vm188_vm6, %v176_v48, %v187_v56  ;;  %vm243_vm6 = vcmask 523719  }
 0x178   :  { %v972_v59 = vpop.eup %971  ;;  %v1125_v60 = vsel %vm190_vm7, %v191_v57, %v189_v58 }
 0x179   :  { %v180_v61 = vmul.f32 %v972_v59, %v175_v53  ;;  %251 = vrot.lane.b32.xlu0 %v1125_v60, %s1031_s0  ;;  %246 = vrot.lane.b32.xlu1 %v1125_v60, %s1032_s23  ;;  %v974_v62 = vpop.eup %973 }
 0x17a   :  { %v201_v2 = vmul.f32 %v974_v62, %v178_v54  ;;  %v976_v10 = vpop.eup %975 }
 0x17b   :  { %v182_v0 = vsel %vm181_vm8, %v175_v53, %v180_v61  ;;  %v194_v11 = vmul.f32 %v976_v10, %v177_v4 }
 0x17c   :  { %v185_v1 = vsel %vm183_vm10, %v184_v63, %v182_v0  ;;  %v203_v7 = vsel %vm202_vm11, %v178_v54, %v201_v2 }
 0x17d   :  { %259 = vrot.lane.b32.xlu0 %v1125_v60, %s1033_s24  ;;  %255 = vrot.lane.b32.xlu1 %v1125_v60, %s1034_s25  ;;  %208 = vst.msk [vmem:[#allocation2] sm:$0x1] %vm207_vm9, %v185_v1  ;;  %v1140_v9 = vsel %vm204_vm12, %v205_v8, %v203_v7  ;;  %v196_v12 = vsel %vm195_vm13, %v177_v4, %v194_v11  ;;  %v336_v16 = vsel %vm335_vm15, %v185_v1, -1e+30 }
 0x17e   :  { %v1158_v14 = vsel %vm197_vm14, %v198_v13, %v196_v12 }
 0x181   :  { %267 = vrot.lane.b32.xlu0 %v1125_v60, %s1035_s26  ;;  %263 = vrot.lane.b32.xlu1 %v1125_v60, %s1036_s27 }
 0x185   :  { %310 = vrot.lane.b32.xlu0 %v1140_v9, %s1037_s28  ;;  %271 = vrot.lane.b32.xlu1 %v1125_v60, %s1038_s29 }
 0x189   :  { %319 = vrot.lane.b32.xlu0 %v1140_v9, %s1031_s0  ;;  %306 = vrot.lane.b32.xlu1 %v1140_v9, %s1039_s30 }
 0x18d   :  { %327 = vrot.lane.b32.xlu0 %v1140_v9, %s1033_s24  ;;  %314 = vrot.lane.b32.xlu1 %v1140_v9, %s1032_s23 }
 0x191   :  { %323 = vrot.lane.b32.xlu1 %v1140_v9, %s1034_s25  ;;  %210 = vrot.lane.b32.xlu0 %v185_v1, %s1031_s0 }
 0x195   :  { %331 = vrot.lane.b32.xlu1 %v1140_v9, %s1036_s27  ;;  %230 = vrot.lane.b32.xlu0 %v185_v1, %s1035_s26 }
 0x199   :  { %215 = vrot.lane.b32.xlu1 %v185_v1, %s1034_s25  ;;  %240 = vrot.lane.b32.xlu0 %v185_v1, %s1040_s5 }
 0x19d   :  { %220 = vrot.lane.b32.xlu1 %v185_v1, %s1033_s24  ;;  %276 = vrot.lane.b32.xlu0 %v1158_v14, %s1037_s28 }
 0x1a1   :  { %225 = vrot.lane.b32.xlu1 %v185_v1, %s1036_s27  ;;  %285 = vrot.lane.b32.xlu0 %v1158_v14, %s1031_s0 }
 0x1a5   :  { %235 = vrot.lane.b32.xlu1 %v185_v1, %s1038_s29  ;;  %293 = vrot.lane.b32.xlu0 %v1158_v14, %s1033_s24 }
 0x1a9   :  { %280 = vrot.lane.b32.xlu1 %v1158_v14, %s1032_s23  ;;  %301 = vrot.lane.b32.xlu0 %v1158_v14, %s1035_s26 }
 0x1ad   :  { %289 = vrot.lane.b32.xlu1 %v1158_v14, %s1034_s25  ;;  %341 = vperm.xlu0 %938, %v336_v16  }
 0x1b1   :  { %297 = vrot.lane.b32.xlu1 %v1158_v14, %s1036_s27  ;;  %941 = vset.pattern.permute.xlu0 %v1041_v17 }
 0x1b2   :  { %378 = vperm.xlu0 %941, %v336_v16  }
 0x1b5   :  { %356 = vperm.xlu1 %939, %v336_v16  }
 0x1b6   :  { %944 = vset.pattern.permute.xlu0 %v1042_v18 }
 0x1b7   :  { %411 = vperm.xlu0 %944, %v336_v16  }
 0x1b9   :  { %940 = vset.pattern.permute.xlu1 %v1043_v19 }
 0x1ba   :  { %367 = vperm.xlu1 %940, %v336_v16  }
 0x1bb   :  { %946 = vset.pattern.permute.xlu0 %v1029_v25 }
 0x1be   :  { %942 = vset.pattern.permute.xlu1 %v1044_v20 }
 0x1bf   :  { %389 = vperm.xlu1 %942, %v336_v16  }
 0x1c3   :  { %943 = vset.pattern.permute.xlu1 %v1045_v21 }
 0x1c4   :  { %400 = vperm.xlu1 %943, %v336_v16  }
 0x1c8   :  { %945 = vset.pattern.permute.xlu1 %v1046_v22 }
 0x1c9   :  { %422 = vperm.xlu1 %945, %v336_v16  }
 0x1cd   :  { %947 = vset.pattern.permute.xlu1 %v1030_v26 }
 0x1eb   :  { %v252_v23 = vpop.permute.xlu0 %251  ;;  %v247_v24 = vpop.permute.xlu1 %246 }
 0x1ec   :  { %249 = vst.msk [vmem:[#allocation2 + $0x1] sm:$0x1] %vm207_vm9, %v247_v24  ;;  %v468_v27 = vsel %vm335_vm15, %v247_v24, -1e+30 }
 0x1ed   :  { %250 = vst.msk [vmem:[#allocation2] sm:$0x2] %vm213_vm0, %v1125_v60  ;;  %488 = vperm.xlu1 %947, %v468_v27   ;;  %473 = vperm.xlu0 %946, %v468_v27  }
 0x1ee   :  { %254 = vst.msk [vmem:[#allocation2 - $0x1] sm:$0x4] %vm218_vm1, %v252_v23 }
 0x1ef   :  { %v260_v28 = vpop.permute.xlu0 %259  ;;  %v256_v29 = vpop.permute.xlu1 %255 }
 0x1f0   :  { %258 = vst.msk [vmem:[#allocation2 - $0x2] sm:$0x8] %vm223_vm2, %v256_v29 }
 0x1f1   :  { %948 = vset.pattern.permute.xlu1 %v1043_v19  ;;  %951 = vset.pattern.permute.xlu0 %v1041_v17  ;;  %262 = vst.msk [vmem:[#allocation2 - $0x3] sm:$0x10] %vm228_vm3, %v260_v28 }
 0x1f2   :  { %499 = vperm.xlu1 %948, %v468_v27   ;;  %510 = vperm.xlu0 %951, %v468_v27  }
 0x1f3   :  { %v268_v30 = vpop.permute.xlu0 %267  ;;  %v264_v31 = vpop.permute.xlu1 %263 }
 0x1f4   :  { %266 = vst.msk [vmem:[#allocation2 - $0x4] sm:$0x20] %vm233_vm4, %v264_v31 }
 0x1f5   :  { %270 = vst.msk [vmem:[#allocation2 - $0x5] sm:$0x40] %vm238_vm5, %v268_v30 }
 0x1f6   :  { %953 = vset.pattern.permute.xlu0 %v1044_v20  ;;  %949 = vset.pattern.permute.xlu1 %v1029_v25 }
 0x1f7   :  { %v311_v32 = vpop.permute.xlu0 %310  ;;  %v272_v33 = vpop.permute.xlu1 %271  ;;  %521 = vperm.xlu0 %953, %v468_v27  }
 0x1f8   :  { %274 = vst.msk [vmem:[#allocation2 - $0x6] sm:$0x80] %vm243_vm6, %v272_v33 }
 0x1fb   :  { %v320_v34 = vpop.permute.xlu0 %319  ;;  %v307_v35 = vpop.permute.xlu1 %306  ;;  %955 = vset.pattern.permute.xlu0 %v1045_v21 }
 0x1fc   :  { %309 = vst.msk [vmem:[#allocation2 + $0x3] sm:$0x1] %vm207_vm9, %v307_v35  ;;  %v718_v36 = vsel %vm335_vm15, %v307_v35, -1e+30  ;;  %532 = vperm.xlu0 %955, %v468_v27  }
 0x1fd   :  { %313 = vst.msk [vmem:[#allocation2 + $0x2] sm:$0x2] %vm213_vm0, %v311_v32  ;;  %723 = vperm.xlu1 %949, %v718_v36  }
 0x1ff   :  { %v328_v37 = vpop.permute.xlu0 %327  ;;  %v315_v38 = vpop.permute.xlu1 %314 }
 0x200   :  { %317 = vst.msk [vmem:[#allocation2 + $0x1] sm:$0x4] %vm218_vm1, %v315_v38  ;;  %957 = vset.pattern.permute.xlu0 %v1042_v18 }
 0x201   :  { %318 = vst.msk [vmem:[#allocation2] sm:$0x8] %vm223_vm2, %v1140_v9  ;;  %950 = vset.pattern.permute.xlu1 %v1030_v26  ;;  %543 = vperm.xlu0 %957, %v468_v27  }
 0x202   :  { %322 = vst.msk [vmem:[#allocation2 - $0x1] sm:$0x10] %vm228_vm3, %v320_v34  ;;  %738 = vperm.xlu1 %950, %v718_v36  }
 0x203   :  { %v324_v39 = vpop.permute.xlu1 %323  ;;  %v211_v40 = vpop.permute.xlu0 %210 }
 0x204   :  { %326 = vst.msk [vmem:[#allocation2 - $0x2] sm:$0x20] %vm233_vm4, %v324_v39 }
 0x205   :  { %214 = vst.msk [vmem:[#allocation2 - $0x1] sm:$0x2] %vm213_vm0, %v211_v40  ;;  %959 = vset.pattern.permute.xlu0 %v1046_v22  ;;  %v1267_v40 = vld [vmem:[%s1382_s2] ss:$0 sm:$0xff]  ;;  %s1048_s2 = smov [#allocation5]  }
 0x206   :  { %330 = vst.msk [vmem:[#allocation2 - $0x3] sm:$0x40] %vm238_vm5, %v328_v37  ;;  %952 = vset.pattern.permute.xlu1 %v1043_v19  ;;  %554 = vperm.xlu0 %959, %v468_v27   ;;  %s862_s9 = sshll.u32 %s1048_s2, 4  ;;  %s863_s9 = int_to_ptr.vmem [resolvable:$true] %s862_s9 }
 0x207   :  { %v332_v41 = vpop.permute.xlu1 %331  ;;  %v231_v42 = vpop.permute.xlu0 %230  ;;  %749 = vperm.xlu1 %952, %v718_v36   ;;  %s985_s10 = scalar_lea.vmem %s863_s9, 16  ;;  %s989_s11 = scalar_lea.vmem %s863_s9, 32 }
 0x208   :  { %334 = vst.msk [vmem:[#allocation2 - $0x4] sm:$0x80] %vm243_vm6, %v332_v41  ;;  %p986_p0 = scmp.ne.s32.totalorder %s863_s9, %s985_s10  ;;  %p990_p1 = scmp.lt.s32.totalorder %s863_s9, %s863_s9 }
 0x209   :  { %p991_p2 = scmp.lt.s32.totalorder %s989_s11, %s985_s10 }
 0x20a   :  { %804 = vperm.xlu0 %959, %v718_v36  }
 0x20b   :  { %v216_v43 = vpop.permute.xlu1 %215  ;;  %v241_v44 = vpop.permute.xlu0 %240  ;;  %954 = vset.pattern.permute.xlu1 %v1041_v17  ;;  %p992_p3 = por %p991_p2, %p990_p1 }
 0x20c   :  { %219 = vst.msk [vmem:[#allocation2 - $0x2] sm:$0x4] %vm218_vm1, %v216_v43  ;;  %760 = vperm.xlu1 %954, %v718_v36  }
 0x20d   :  { %p993_p4 = pnand %p992_p3, %p986_p0 }
 0x20f   :  { %v221_v45 = vpop.permute.xlu1 %220  ;;  %v277_v46 = vpop.permute.xlu0 %276 }
 0x210   :  { %224 = vst.msk [vmem:[#allocation2 - $0x3] sm:$0x8] %vm223_vm2, %v221_v45  ;;  %956 = vset.pattern.permute.xlu1 %v1044_v20  ;;  %v593_v52 = vsel %vm335_vm15, %v277_v46, -1e+30  ;;  %vm440_vm15 = vcmask 523264  }
 0x211   :  { %279 = vst.msk [vmem:[#allocation2 + $0x2] sm:$0x1] %vm207_vm9, %v277_v46  ;;  %771 = vperm.xlu1 %956, %v718_v36  }
 0x213   :  { %v226_v47 = vpop.permute.xlu1 %225  ;;  %v286_v49 = vpop.permute.xlu0 %285 }
 0x214   :  { %229 = vst.msk [vmem:[#allocation2 - $0x4] sm:$0x10] %vm228_vm3, %v226_v47 }
 0x215   :  { %234 = vst.msk [vmem:[#allocation2 - $0x5] sm:$0x20] %vm233_vm4, %v231_v42  ;;  %958 = vset.pattern.permute.xlu1 %v1045_v21 }
 0x216   :  { %782 = vperm.xlu1 %958, %v718_v36  }
 0x217   :  { %v236_v48 = vpop.permute.xlu1 %235  ;;  %v294_v51 = vpop.permute.xlu0 %293 }
 0x218   :  { %239 = vst.msk [vmem:[#allocation2 - $0x6] sm:$0x40] %vm238_vm5, %v236_v48 }
 0x219   :  { %244 = vst.msk [vmem:[#allocation2 - $0x7] sm:$0x80] %vm243_vm6, %v241_v44 }
 0x21a   :  { %960 = vset.pattern.permute.xlu1 %v1042_v18 }
 0x21b   :  { %v281_v50 = vpop.permute.xlu1 %280  ;;  %793 = vperm.xlu1 %960, %v718_v36   ;;  %v302_v55 = vpop.permute.xlu0 %301 }
 0x21c   :  { %283 = vst.msk [vmem:[#allocation2 + $0x1] sm:$0x2] %vm213_vm0, %v281_v50 }
 0x21d   :  { %284 = vst.msk [vmem:[#allocation2] sm:$0x4] %vm218_vm1, %v1158_v14 }
 0x21e   :  { %288 = vst.msk [vmem:[#allocation2 - $0x1] sm:$0x8] %vm223_vm2, %v286_v49 }
 0x21f   :  { %v290_v53 = vpop.permute.xlu1 %289  ;;  %961 = vset.pattern.permute.xlu1 %v1029_v25  ;;  %v1248_v25 = vsub.s32 0, %v1107_v5 }
 0x220   :  { %292 = vst.msk [vmem:[#allocation2 - $0x2] sm:$0x10] %vm228_vm3, %v290_v53  ;;  %598 = vperm.xlu1 %961, %v593_v52   ;;  %v337_v56 = vld [vmem:[#allocation2] sm:$0x1] }
 0x221   :  { %296 = vst.msk [vmem:[#allocation2 - $0x3] sm:$0x20] %vm233_vm4, %v294_v51  ;;  %v882_v57 = vadd.f32 -0.2, %v337_v56 }
 0x223   :  { %v298_v54 = vpop.permute.xlu1 %297  ;;  %v347_v59 = vrot.slane %v882_v57, %v1248_v25 }
 0x224   :  { %300 = vst.msk [vmem:[#allocation2 - $0x4] sm:$0x40] %vm238_vm5, %v298_v54  ;;  %962 = vset.pattern.permute.xlu1 %v1030_v26 }
 0x225   :  { %304 = vst.msk [vmem:[#allocation2 - $0x5] sm:$0x80] %vm243_vm6, %v302_v55  ;;  %613 = vperm.xlu1 %962, %v593_v52   ;;  %v469_v55 = vld [vmem:[#allocation2 + $0x1] sm:$0x1] }
 0x226   :  { %v884_v57 = vadd.f32 -0.2, %v469_v55 }
 0x228   :  { %v342_v58 = vpop.permute.xlu0 %341 }
 0x229   :  { %963 = vset.pattern.permute.xlu1 %v1043_v19  ;;  %v348_v60 = vsub.f32 %v342_v58, %v347_v59 }
 0x22a   :  { %624 = vperm.xlu1 %963, %v593_v52  }
 0x22b   :  { %v349_v63 = vmax.f32 %v348_v60, 0.0 }
 0x22d   :  { %v379_v26 = vpop.permute.xlu0 %378  ;;  %vm352_vm8 = vcmp.gt.f32.partialorder %v349_v63, 0.0  ;;  %v350_v36 = vmul.f32 %v349_v63, %v349_v63 }
 0x22e   :  { %964 = vset.pattern.permute.xlu1 %v1041_v17  ;;  %v381_v1 = vsub.f32 %v379_v26, %v347_v59  ;;  %v353_v9 = vsel %vm352_vm8, 1.0, %v1047_v3 }
 0x22f   :  { %635 = vperm.xlu1 %964, %v593_v52  }
 0x230   :  { %v357_v61 = vpop.permute.xlu1 %356  ;;  %v382_v7 = vmax.f32 %v381_v1, 0.0 }
 0x231   :  { %v359_v62 = vsub.f32 %v357_v61, %v347_v59 }
 0x232   :  { %v412_v10 = vpop.permute.xlu0 %411  ;;  %vm385_vm10 = vcmp.gt.f32.partialorder %v382_v7, 0.0  ;;  %v383_v44 = vmul.f32 %v382_v7, %v382_v7 }
 0x233   :  { %v360_v0 = vmax.f32 %v359_v62, 0.0  ;;  %965 = vset.pattern.permute.xlu1 %v1044_v20  ;;  %v414_v15 = vsub.f32 %v412_v10, %v347_v59  ;;  %v386_v19 = vsel %vm385_vm10, 1.0, %v1047_v3 }
 0x234   :  { %646 = vperm.xlu1 %965, %v593_v52  }
 0x235   :  { %vm363_vm7 = vcmp.gt.f32.partialorder %v360_v0, 0.0  ;;  %v368_v5 = vpop.permute.xlu1 %367  ;;  %v361_v32 = vmul.f32 %v360_v0, %v360_v0 }
 0x236   :  { %v370_v2 = vsub.f32 %v368_v5, %v347_v59  ;;  %v364_v4 = vsel %vm363_vm7, 1.0, %v1047_v3 }
 0x237   :  { %v365_v11 = vadd.f32 %v364_v4, %v353_v9  ;;  %v362_v39 = vadd.f32 %v361_v32, %v350_v36 }
 0x238   :  { %v371_v8 = vmax.f32 %v370_v2, 0.0  ;;  %966 = vset.pattern.permute.xlu1 %v1045_v21  ;;  %v415_v21 = vmax.f32 %v414_v15, 0.0 }
 0x239   :  { %657 = vperm.xlu1 %966, %v593_v52  }
 0x23a   :  { %vm374_vm9 = vcmp.gt.f32.partialorder %v371_v8, 0.0  ;;  %v390_v12 = vpop.permute.xlu1 %389  ;;  %vm418_vm12 = vcmp.gt.f32.partialorder %v415_v21, 0.0  ;;  %v372_v37 = vmul.f32 %v371_v8, %v371_v8  ;;  %v416_v51 = vmul.f32 %v415_v21, %v415_v21 }
 0x23b   :  { %v375_v13 = vsel %vm374_vm9, 1.0, %v1047_v3  ;;  %v392_v14 = vsub.f32 %v390_v12, %v347_v59  ;;  %v419_v34 = vsel %vm418_vm12, 1.0, %v1047_v3 }
 0x23c   :  { %v376_v16 = vadd.f32 %v375_v13, %v365_v11  ;;  %v373_v42 = vadd.f32 %v372_v37, %v362_v39 }
 0x23d   :  { %v393_v17 = vmax.f32 %v392_v14, 0.0  ;;  %967 = vset.pattern.permute.xlu1 %v1042_v18 }
 0x23e   :  { %668 = vperm.xlu1 %967, %v593_v52   ;;  %v387_v23 = vadd.f32 %v386_v19, %v376_v16  ;;  %v384_v46 = vadd.f32 %v383_v44, %v373_v42 }
 0x23f   :  { %vm396_vm11 = vcmp.gt.f32.partialorder %v393_v17, 0.0  ;;  %v401_v20 = vpop.permute.xlu1 %400  ;;  %v394_v47 = vmul.f32 %v393_v17, %v393_v17 }
 0x240   :  { %v403_v24 = vsub.f32 %v401_v20, %v347_v59  ;;  %v397_v27 = vsel %vm396_vm11, 1.0, %v1047_v3 }
 0x241   :  { %v398_v29 = vadd.f32 %v397_v27, %v387_v23  ;;  %v395_v49 = vadd.f32 %v394_v47, %v384_v46 }
 0x242   :  { %v404_v28 = vmax.f32 %v403_v24, 0.0  ;;  %968 = vset.pattern.permute.xlu1 %v1046_v22 }
 0x243   :  { %679 = vperm.xlu1 %968, %v593_v52  }
 0x244   :  { %vm407_vm13 = vcmp.gt.f32.partialorder %v404_v28, 0.0  ;;  %v423_v30 = vpop.permute.xlu1 %422  ;;  %v405_v48 = vmul.f32 %v404_v28, %v404_v28 }
 0x245   :  { %v408_v18 = vsel %vm407_vm13, 1.0, %v1047_v3  ;;  %v425_v31 = vsub.f32 %v423_v30, %v347_v59  ;;  %v479_v59 = vrot.slane %v884_v57, %v1248_v25 }
 0x246   :  { %v409_v33 = vadd.f32 %v408_v18, %v398_v29  ;;  %v406_v50 = vadd.f32 %v405_v48, %v395_v49 }
 0x247   :  { %v426_v35 = vmax.f32 %v425_v31, 0.0 }
 0x248   :  { %v420_v38 = vadd.f32 %v419_v34, %v409_v33  ;;  %v417_v53 = vadd.f32 %v416_v51, %v406_v50  ;;  %v719_v34 = vld [vmem:[#allocation2 + $0x3] sm:$0x1] }
 0x249   :  { %vm429_vm14 = vcmp.gt.f32.partialorder %v426_v35, 0.0  ;;  %v427_v52 = vmul.f32 %v426_v35, %v426_v35 }
 0x24a   :  { %v430_v22 = vsel %vm429_vm14, 1.0, %v1047_v3 }
 0x24b   :  { %v431_v41 = vadd.f32 %v430_v22, %v420_v38  ;;  %v428_v54 = vadd.f32 %v427_v52, %v417_v53  ;;  %v886_v22 = vadd.f32 -0.2, %v719_v34 }
 0x24d   :  { %v439_v43 = vmul.f32 %v1267_v40, %v431_v41  ;;  %v438_v56 = vmul.f32 %v1267_v40, %v428_v54  ;;  %v729_v53 = vrot.slane %v886_v22, %v1248_v25 }
 0x24f   :  { %v451_v45 = vsel %vm440_vm15, %v439_v43, 0.0  ;;  %v441_v58 = vsel %vm440_vm15, %v438_v56, 0.0 }
 0x250   :  { %452 = vadd.xlane.f32.xlu0 %v451_v45 }
 0x267   :  { %442 = vadd.xlane.f32.xlu1 %v441_v58 }
 0x268   :  { %v489_v60 = vpop.permute.xlu1 %488  ;;  %v474_v61 = vpop.permute.xlu0 %473 }
 0x269   :  { %v491_v26 = vsub.f32 %v489_v60, %v479_v59  ;;  %v480_v62 = vsub.f32 %v474_v61, %v479_v59 }
 0x26b   :  { %v492_v1 = vmax.f32 %v491_v26, 0.0  ;;  %v481_v5 = vmax.f32 %v480_v62, 0.0 }
 0x26d   :  { %v500_v63 = vpop.permute.xlu1 %499  ;;  %v511_v0 = vpop.permute.xlu0 %510  ;;  %vm495_vm0 = vcmp.gt.f32.partialorder %v492_v1, 0.0  ;;  %vm484_vm1 = vcmp.gt.f32.partialorder %v481_v5, 0.0  ;;  %v493_v10 = vmul.f32 %v492_v1, %v492_v1  ;;  %v482_v12 = vmul.f32 %v481_v5, %v481_v5 }
 0x26e   :  { %v502_v2 = vsub.f32 %v500_v63, %v479_v59  ;;  %v513_v7 = vsub.f32 %v511_v0, %v479_v59  ;;  %v496_v11 = vsel %vm495_vm0, 1.0, %v1047_v3  ;;  %v485_v13 = vsel %vm484_vm1, 1.0, %v1047_v3 }
 0x26f   :  { %v497_v19 = vadd.f32 %v496_v11, %v485_v13  ;;  %v494_v24 = vadd.f32 %v493_v10, %v482_v12 }
 0x270   :  { %v503_v4 = vmax.f32 %v502_v2, 0.0  ;;  %v514_v14 = vmax.f32 %v513_v7, 0.0 }
 0x272   :  { %v522_v8 = vpop.permute.xlu0 %521  ;;  %vm506_vm2 = vcmp.gt.f32.partialorder %v503_v4, 0.0  ;;  %v504_v15 = vmul.f32 %v503_v4, %v503_v4  ;;  %vm517_vm3 = vcmp.gt.f32.partialorder %v514_v14, 0.0  ;;  %v515_v18 = vmul.f32 %v514_v14, %v514_v14 }
 0x273   :  { %v524_v9 = vsub.f32 %v522_v8, %v479_v59  ;;  %v507_v16 = vsel %vm506_vm2, 1.0, %v1047_v3  ;;  %v518_v31 = vsel %vm517_vm3, 1.0, %v1047_v3 }
 0x274   :  { %v508_v27 = vadd.f32 %v507_v16, %v497_v19  ;;  %v505_v29 = vadd.f32 %v504_v15, %v494_v24 }
 0x275   :  { %v525_v20 = vmax.f32 %v524_v9, 0.0 }
 0x276   :  { %v519_v35 = vadd.f32 %v518_v31, %v508_v27  ;;  %v516_v36 = vadd.f32 %v515_v18, %v505_v29 }
 0x277   :  { %v533_v17 = vpop.permute.xlu0 %532  ;;  %vm528_vm4 = vcmp.gt.f32.partialorder %v525_v20, 0.0  ;;  %v526_v37 = vmul.f32 %v525_v20, %v525_v20 }
 0x278   :  { %v535_v21 = vsub.f32 %v533_v17, %v479_v59  ;;  %v724_v23 = vpop.permute.xlu1 %723  ;;  %v529_v38 = vsel %vm528_vm4, 1.0, %v1047_v3 }
 0x279   :  { %v530_v44 = vadd.f32 %v529_v38, %v519_v35  ;;  %v527_v47 = vadd.f32 %v526_v37, %v516_v36 }
 0x27a   :  { %v536_v28 = vmax.f32 %v535_v21, 0.0 }
 0x27c   :  { %v544_v30 = vpop.permute.xlu0 %543  ;;  %vm539_vm5 = vcmp.gt.f32.partialorder %v536_v28, 0.0  ;;  %v537_v41 = vmul.f32 %v536_v28, %v536_v28 }
 0x27d   :  { %v546_v32 = vsub.f32 %v544_v30, %v479_v59  ;;  %v739_v33 = vpop.permute.xlu1 %738  ;;  %v540_v42 = vsel %vm539_vm5, 1.0, %v1047_v3 }
 0x27e   :  { %v541_v50 = vadd.f32 %v540_v42, %v530_v44  ;;  %v538_v52 = vadd.f32 %v537_v41, %v527_v47  ;;  %v741_v57 = vsub.f32 %v739_v33, %v729_v53 }
 0x27f   :  { %v547_v39 = vmax.f32 %v546_v32, 0.0 }
 0x280   :  { %v742_v0 = vmax.f32 %v741_v57, 0.0 }
 0x281   :  { %vm550_vm6 = vcmp.gt.f32.partialorder %v547_v39, 0.0  ;;  %v555_v43 = vpop.permute.xlu0 %554  ;;  %v548_v48 = vmul.f32 %v547_v39, %v547_v39 }
 0x282   :  { %v557_v45 = vsub.f32 %v555_v43, %v479_v59  ;;  %v750_v46 = vpop.permute.xlu1 %749  ;;  %v551_v49 = vsel %vm550_vm6, 1.0, %v1047_v3  ;;  %v730_v59 = vsub.f32 %v724_v23, %v729_v53  ;;  %v743_v10 = vmul.f32 %v742_v0, %v742_v0  ;;  %v594_v43 = vld [vmem:[#allocation2 + $0x2] sm:$0x1] }
 0x283   :  { %v552_v54 = vadd.f32 %v551_v49, %v541_v50  ;;  %v549_v56 = vadd.f32 %v548_v48, %v538_v52  ;;  %v752_v26 = vsub.f32 %v750_v46, %v729_v53  ;;  %vm745_vm8 = vcmp.gt.f32.partialorder %v742_v0, 0.0 }
 0x284   :  { %v558_v51 = vmax.f32 %v557_v45, 0.0  ;;  %v731_v7 = vmax.f32 %v730_v59, 0.0  ;;  %v885_v45 = vadd.f32 -0.2, %v594_v43 }
 0x285   :  { %v753_v8 = vmax.f32 %v752_v26, 0.0  ;;  %v805_v17 = vpop.permute.xlu0 %804 }
 0x286   :  { %v559_v55 = vmul.f32 %v558_v51, %v558_v51  ;;  %vm561_vm7 = vcmp.gt.f32.partialorder %v558_v51, 0.0  ;;  %v732_v13 = vmul.f32 %v731_v7, %v731_v7  ;;  %v807_v27 = vsub.f32 %v805_v17, %v729_v53 }
 0x287   :  { %v562_v58 = vsel %vm561_vm7, 1.0, %v1047_v3  ;;  %v761_v60 = vpop.permute.xlu1 %760  ;;  %v754_v14 = vmul.f32 %v753_v8, %v753_v8  ;;  %v1306_v47 = vrot.slane %v885_v45, %v1248_v25  ;;  %vm734_vm9 = vcmp.gt.f32.partialorder %v731_v7, 0.0 }
 0x288   :  { %v563_v61 = vadd.f32 %v562_v58, %v552_v54  ;;  %v560_v62 = vadd.f32 %v559_v55, %v549_v56  ;;  %v763_v1 = vsub.f32 %v761_v60, %v729_v53  ;;  %v744_v20 = vadd.f32 %v743_v10, %v732_v13 }
 0x289   :  { %v1295_v32 = vmax.f32 %v807_v27, 0.0  ;;  %v746_v55 = vsel %vm745_vm8, 1.0, %v1047_v3  ;;  %vm756_vm10 = vcmp.gt.f32.partialorder %v753_v8, 0.0  ;;  %v735_v58 = vsel %vm734_vm9, 1.0, %v1047_v3 }
 0x28a   :  { %v565_v63 = vmul.f32 %v1267_v40, %v563_v61  ;;  %v564_v4 = vmul.f32 %v1267_v40, %v560_v62  ;;  %v764_v11 = vmax.f32 %v763_v1, 0.0  ;;  %v755_v24 = vadd.f32 %v754_v14, %v744_v20 }
 0x28b   :  { %v809_v38 = vmul.f32 %v1295_v32, %v1295_v32  ;;  %v757_v60 = vsel %vm756_vm10, 1.0, %v1047_v3  ;;  %v747_v59 = vadd.f32 %v746_v55, %v735_v58  ;;  %vm811_vm7 = vcmp.gt.f32.partialorder %v1295_v32, 0.0 }
 0x28c   :  { %v772_v5 = vpop.permute.xlu1 %771  ;;  %v576_v2 = vsel %vm440_vm15, %v565_v63, 0.0  ;;  %v566_v12 = vsel %vm440_vm15, %v564_v4, 0.0  ;;  %v765_v21 = vmul.f32 %v764_v11, %v764_v11  ;;  %vm767_vm11 = vcmp.gt.f32.partialorder %v764_v11, 0.0 }
 0x28d   :  { %v774_v9 = vsub.f32 %v772_v5, %v729_v53  ;;  %577 = vadd.xlane.f32.xlu1 %v576_v2  ;;  %v768_v26 = vsel %vm767_vm11, 1.0, %v1047_v3  ;;  %v758_v1 = vadd.f32 %v757_v60, %v747_v59  ;;  %vm590_vm9 = vcmp.eq.s32.totalorder %v1109_v6, 1 }
 0x28e   :  { %v766_v30 = vadd.f32 %v765_v21, %v755_v24  ;;  %vm715_vm10 = vcmp.eq.s32.totalorder %v1109_v6, 2  ;;  %vm840_vm11 = vcmp.eq.s32.totalorder %v1109_v6, 3 }
 0x28f   :  { %v1287_v15 = vmax.f32 %v774_v9, 0.0  ;;  %v769_v4 = vadd.f32 %v768_v26, %v758_v1 }
 0x291   :  { %v783_v16 = vpop.permute.xlu1 %782  ;;  %567 = vadd.xlane.f32.xlu1 %v566_v12  ;;  %v776_v28 = vmul.f32 %v1287_v15, %v1287_v15  ;;  %vm778_vm0 = vcmp.gt.f32.partialorder %v1287_v15, 0.0 }
 0x292   :  { %v785_v19 = vsub.f32 %v783_v16, %v729_v53  ;;  %v779_v9 = vsel %vm778_vm0, 1.0, %v1047_v3 }
 0x293   :  { %v777_v33 = vadd.f32 %v776_v28, %v766_v30  ;;  %v780_v20 = vadd.f32 %v779_v9, %v769_v4 }
 0x294   :  { %v1289_v23 = vmax.f32 %v785_v19, 0.0 }
 0x296   :  { %v794_v29 = vpop.permute.xlu1 %793  ;;  %v787_v18 = vmul.f32 %v1289_v23, %v1289_v23  ;;  %vm789_vm1 = vcmp.gt.f32.partialorder %v1289_v23, 0.0 }
 0x297   :  { %v796_v31 = vsub.f32 %v794_v29, %v729_v53  ;;  %v790_v13 = vsel %vm789_vm1, 1.0, %v1047_v3 }
 0x298   :  { %v788_v35 = vadd.f32 %v787_v18, %v777_v33  ;;  %v791_v30 = vadd.f32 %v790_v13, %v780_v20 }
 0x299   :  { %v1297_v34 = vmax.f32 %v796_v31, 0.0 }
 0x29b   :  { %v798_v36 = vmul.f32 %v1297_v34, %v1297_v34  ;;  %v599_v37 = vpop.permute.xlu1 %598  ;;  %vm800_vm4 = vcmp.gt.f32.partialorder %v1297_v34, 0.0 }
 0x29c   :  { %v605_v50 = vsub.f32 %v599_v37, %v1306_v47  ;;  %v801_v24 = vsel %vm800_vm4, 1.0, %v1047_v3 }
 0x29d   :  { %v799_v39 = vadd.f32 %v798_v36, %v788_v35  ;;  %v802_v37 = vadd.f32 %v801_v24, %v791_v30 }
 0x29e   :  { %v606_v56 = vmax.f32 %v605_v50, 0.0 }
 0x29f   :  { %v810_v22 = vadd.f32 %v809_v38, %v799_v39 }
 0x2a0   :  { %v614_v41 = vpop.permute.xlu1 %613  ;;  %vm609_vm13 = vcmp.gt.f32.partialorder %v606_v56, 0.0  ;;  %v607_v16 = vmul.f32 %v606_v56, %v606_v56 }
 0x2a1   :  { %v814_v42 = vmul.f32 %v1267_v40, %v810_v22  ;;  %v616_v49 = vsub.f32 %v614_v41, %v1306_v47  ;;  %v610_v7 = vsel %vm609_vm13, 1.0, %v1047_v3 }
 0x2a3   :  { %v816_v44 = vsel %vm440_vm15, %v814_v42, 0.0  ;;  %v617_v52 = vmax.f32 %v616_v49, 0.0 }
 0x2a4   :  { %817 = vadd.xlane.f32.xlu1 %v816_v44 }
 0x2a5   :  { %v625_v46 = vpop.permute.xlu1 %624  ;;  %vm620_vm12 = vcmp.gt.f32.partialorder %v617_v52, 0.0  ;;  %v618_v10 = vmul.f32 %v617_v52, %v617_v52 }
 0x2a6   :  { %v627_v51 = vsub.f32 %v625_v46, %v1306_v47  ;;  %v621_v5 = vsel %vm620_vm12, 1.0, %v1047_v3  ;;  %v812_v46 = vsel %vm811_vm7, 1.0, %v1047_v3  ;;  %vm843_vm12 = vcmask 24576  }
 0x2a7   :  { %v622_v11 = vadd.f32 %v621_v5, %v610_v7  ;;  %v619_v27 = vadd.f32 %v618_v10, %v607_v16 }
 0x2a8   :  { %v628_v25 = vmax.f32 %v627_v51, 0.0  ;;  %v813_v51 = vadd.f32 %v812_v46, %v802_v37 }
 0x2aa   :  { %v636_v48 = vpop.permute.xlu1 %635  ;;  %vm631_vm14 = vcmp.gt.f32.partialorder %v628_v25, 0.0  ;;  %v629_v17 = vmul.f32 %v628_v25, %v628_v25 }
 0x2ab   :  { %v638_v53 = vsub.f32 %v636_v48, %v1306_v47  ;;  %v632_v8 = vsel %vm631_vm14, 1.0, %v1047_v3 }
 0x2ac   :  { %v633_v19 = vadd.f32 %v632_v8, %v622_v11  ;;  %v630_v33 = vadd.f32 %v629_v17, %v619_v27 }
 0x2ad   :  { %v639_v61 = vmax.f32 %v638_v53, 0.0 }
 0x2af   :  { %v647_v54 = vpop.permute.xlu1 %646  ;;  %vm642_vm2 = vcmp.gt.f32.partialorder %v639_v61, 0.0  ;;  %v640_v28 = vmul.f32 %v639_v61, %v639_v61 }
 0x2b0   :  { %v649_v57 = vsub.f32 %v647_v54, %v1306_v47  ;;  %v643_v14 = vsel %vm642_vm2, 1.0, %v1047_v3  ;;  %v815_v54 = vmul.f32 %v1267_v40, %v813_v51 }
 0x2b1   :  { %v644_v29 = vadd.f32 %v643_v14, %v633_v19  ;;  %v641_v39 = vadd.f32 %v640_v28, %v630_v33 }
 0x2b2   :  { %v650_v63 = vmax.f32 %v649_v57, 0.0  ;;  %v826_v56 = vsel %vm440_vm15, %v815_v54, 0.0 }
 0x2b4   :  { %v658_v62 = vpop.permute.xlu1 %657  ;;  %vm653_vm3 = vcmp.gt.f32.partialorder %v650_v63, 0.0  ;;  %v651_v34 = vmul.f32 %v650_v63, %v650_v63 }
 0x2b5   :  { %v660_v0 = vsub.f32 %v658_v62, %v1306_v47  ;;  %v654_v21 = vsel %vm653_vm3, 1.0, %v1047_v3 }
 0x2b6   :  { %v655_v35 = vadd.f32 %v654_v21, %v644_v29  ;;  %v652_v43 = vadd.f32 %v651_v34, %v641_v39 }
 0x2b7   :  { %v661_v2 = vmax.f32 %v660_v0, 0.0 }
 0x2b9   :  { %v669_v12 = vpop.permute.xlu1 %668  ;;  %vm664_vm5 = vcmp.gt.f32.partialorder %v661_v2, 0.0  ;;  %v662_v22 = vmul.f32 %v661_v2, %v661_v2 }
 0x2ba   :  { %v671_v15 = vsub.f32 %v669_v12, %v1306_v47  ;;  %v665_v18 = vsel %vm664_vm5, 1.0, %v1047_v3 }
 0x2bb   :  { %v666_v41 = vadd.f32 %v665_v18, %v655_v35  ;;  %v663_v49 = vadd.f32 %v662_v22, %v652_v43 }
 0x2bc   :  { %v672_v23 = vmax.f32 %v671_v15, 0.0 }
 0x2be   :  { %vm675_vm6 = vcmp.gt.f32.partialorder %v672_v23, 0.0  ;;  %v680_v31 = vpop.permute.xlu1 %679  ;;  %v673_v44 = vmul.f32 %v672_v23, %v672_v23 }
 0x2bf   :  { %v682_v36 = vsub.f32 %v680_v31, %v1306_v47  ;;  %v676_v38 = vsel %vm675_vm6, 1.0, %v1047_v3 }
 0x2c0   :  { %v677_v45 = vadd.f32 %v676_v38, %v666_v41  ;;  %v674_v32 = vadd.f32 %v673_v44, %v663_v49 }
 0x2c1   :  { %v683_v42 = vmax.f32 %v682_v36, 0.0 }
 0x2c3   :  { %vm686_vm8 = vcmp.gt.f32.partialorder %v683_v42, 0.0  ;;  %v684_v50 = vmul.f32 %v683_v42, %v683_v42 }
 0x2c4   :  { %v687_v48 = vsel %vm686_vm8, 1.0, %v1047_v3 }
 0x2c5   :  { %v688_v47 = vadd.f32 %v687_v48, %v677_v45  ;;  %v685_v55 = vadd.f32 %v684_v50, %v674_v32 }
 0x2c7   :  { %v690_v52 = vmul.f32 %v1267_v40, %v688_v47  ;;  %v689_v25 = vmul.f32 %v1267_v40, %v685_v55 }
 0x2c9   :  { %v701_v53 = vsel %vm440_vm15, %v690_v52, 0.0  ;;  %v691_v3 = vsel %vm440_vm15, %v689_v25, 0.0  ;;  %vm465_vm15 = vcmp.eq.s32.totalorder %v1109_v6, 0 }
 0x2ca   :  { %702 = vadd.xlane.f32.xlu0 %v701_v53 }
 0x2ce   :  { %827 = vadd.xlane.f32.xlu0 %v826_v56 }
 0x2d2   :  { %692 = vadd.xlane.f32.xlu0 %v691_v3 }
 0x2d9   :  { %v453_v60 = vpop.xlane.xlu0 %452 }
 0x2da   :  { %v454_v59 = vrot.slane %v453_v60, 4 }
 0x2dc   :  { %v455_v62 = vadd.f32 %v454_v59, %v453_v60 }
 0x2de   :  { %v456_v0 = vrot.slane %v455_v62, 2 }
 0x2e0   :  { %v457_v5 = vadd.f32 %v456_v0, %v455_v62 }
 0x2e2   :  { %v458_v8 = vrot.slane %v457_v5, 1 }
 0x2e4   :  { %v1344_v14 = vadd.f32 %v458_v8, %v457_v5 }
 0x2e6   :  { %v461_v29 = vadd.f32 1e-09, %v1344_v14  ;;  %v467_v22 = vsel %vm465_vm15, %v1344_v14, 0.0 }
 0x2f0   :  { %v443_v57 = vpop.xlane.xlu1 %442 }
 0x2f1   :  { %v444_v2 = vrot.slane %v443_v57, 4 }
 0x2f3   :  { %v445_v11 = vadd.f32 %v444_v2, %v443_v57 }
 0x2f5   :  { %v446_v21 = vrot.slane %v445_v11, 2 }
 0x2f7   :  { %v447_v35 = vadd.f32 %v446_v21, %v445_v11 }
 0x2f9   :  { %v448_v45 = vrot.slane %v447_v35, 1 }
 0x2fb   :  { %v449_v53 = vadd.f32 %v448_v45, %v447_v35 }
 0x316   :  { %v578_v58 = vpop.xlane.xlu1 %577 }
 0x317   :  { %v579_v61 = vrot.slane %v578_v58, 4 }
 0x319   :  { %v580_v26 = vadd.f32 %v579_v61, %v578_v58 }
 0x31a   :  { %v568_v7 = vpop.xlane.xlu1 %567 }
 0x31b   :  { %v581_v63 = vrot.slane %v580_v26, 2  ;;  %v569_v9 = vrot.slane %v568_v7, 4 }
 0x31d   :  { %v582_v1 = vadd.f32 %v581_v63, %v580_v26  ;;  %v570_v17 = vadd.f32 %v569_v9, %v568_v7 }
 0x31f   :  { %v583_v4 = vrot.slane %v582_v1, 1  ;;  %v571_v18 = vrot.slane %v570_v17, 2 }
 0x321   :  { %v1342_v12 = vadd.f32 %v583_v4, %v582_v1  ;;  %v572_v41 = vadd.f32 %v571_v18, %v570_v17 }
 0x323   :  { %v586_v23 = vadd.f32 1e-09, %v1342_v12  ;;  %v592_v46 = vsel %vm590_vm9, %v1342_v12, %v467_v22  ;;  %v573_v51 = vrot.slane %v572_v41, 1 }
 0x325   :  { %977 = vrcp.f32 %v586_v23 }
 0x326   :  { %979 = vrcp.f32 %v461_v29 }
 0x32d   :  { %v818_v15 = vpop.xlane.xlu1 %817 }
 0x32e   :  { %v819_v24 = vrot.slane %v818_v15, 4 }
 0x330   :  { %v820_v36 = vadd.f32 %v819_v24, %v818_v15 }
 0x332   :  { %v821_v48 = vrot.slane %v820_v36, 2 }
 0x334   :  { %v822_v54 = vadd.f32 %v821_v48, %v820_v36 }
 0x353   :  { %v703_v40 = vpop.xlane.xlu0 %702 }
 0x354   :  { %v704_v10 = vrot.slane %v703_v40, 4 }
 0x356   :  { %v705_v13 = vadd.f32 %v704_v10, %v703_v40 }
 0x357   :  { %v828_v16 = vpop.xlane.xlu0 %827 }
 0x358   :  { %v706_v19 = vrot.slane %v705_v13, 2  ;;  %v829_v20 = vrot.slane %v828_v16, 4 }
 0x35a   :  { %v707_v27 = vadd.f32 %v706_v19, %v705_v13  ;;  %v830_v28 = vadd.f32 %v829_v20, %v828_v16 }
 0x35b   :  { %v693_v30 = vpop.xlane.xlu0 %692 }
 0x35c   :  { %v708_v31 = vrot.slane %v707_v27, 1  ;;  %v831_v33 = vrot.slane %v830_v28, 2  ;;  %v694_v34 = vrot.slane %v693_v30, 4 }
 0x35e   :  { %v709_v37 = vadd.f32 %v708_v31, %v707_v27  ;;  %v832_v38 = vadd.f32 %v831_v33, %v830_v28  ;;  %v695_v39 = vadd.f32 %v694_v34, %v693_v30 }
 0x360   :  { %v711_v42 = vadd.f32 1e-09, %v709_v37  ;;  %v833_v43 = vrot.slane %v832_v38, 1  ;;  %v696_v44 = vrot.slane %v695_v39, 2  ;;  %v717_v47 = vsel %vm715_vm10, %v709_v37, %v592_v46 }
 0x362   :  { %981 = vrcp.f32 %v711_v42  ;;  %v834_v49 = vadd.f32 %v833_v43, %v832_v38  ;;  %v697_v50 = vadd.f32 %v696_v44, %v695_v39 }
 0x364   :  { %v836_v32 = vadd.f32 1e-09, %v834_v49  ;;  %v842_v52 = vsel %vm840_vm11, %v834_v49, %v717_v47  ;;  %v698_v55 = vrot.slane %v697_v50, 1 }
 0x365   :  { %845 = vst.msk [vmem:[#allocation5] sm:$0x1] %vm843_vm12, %v842_v52 }
 0x366   :  { %983 = vrcp.f32 %v836_v32 }
 0x367   :  { %996 = shalt.err (!%p993_p4)
}
 0x368   :  { %865 = dma.vmem_to_hbm [thread:$0]  %s863_s9, 16, %s1384_s4, [#allocation6]   ;;  %v574_v56 = vadd.f32 %v573_v51, %v572_v41  ;;  %v450_v25 = vmul.f32 80.0, %v449_v53  ;;  %v978_v3 = vpop.eup %977  ;;  %v823_v57 = vrot.slane %v822_v54, 1  ;;  %v699_v58 = vadd.f32 %v698_v55, %v697_v50 }
 0x369   :  { %v980_v60 = vpop.eup %979  ;;  %vm460_vm13 = vcmp.eq.f32.partialorder %v1344_v14, 0.0  ;;  %vm585_vm14 = vcmp.eq.f32.partialorder %v1342_v12, 0.0  ;;  %vm710_vm0 = vcmp.eq.f32.partialorder %v709_v37, 0.0  ;;  %s1049_s4 = smov [#allocation3]   ;;  %vm835_vm1 = vcmp.eq.f32.partialorder %v834_v49, 0.0 }
 0x36a   :  { %v575_v61 = vmul.f32 80.0, %v574_v56  ;;  %v463_v59 = vmul.f32 %v980_v60, %v450_v25  ;;  %v824_v62 = vadd.f32 %v823_v57, %v822_v54  ;;  %v700_v63 = vmul.f32 80.0, %v699_v58  ;;  %s852_s14 = sshll.u32 %s1049_s4, 4  ;;  %s853_s14 = int_to_ptr.vmem [resolvable:$true] %s852_s14 }
 0x36b   :  { %s1005_s15 = scalar_lea.vmem %s853_s14, 16  ;;  %s1009_s16 = scalar_lea.vmem %s853_s14, 32 }
 0x36c   :  { %v588_v26 = vmul.f32 %v978_v3, %v575_v61  ;;  %v464_v5 = vsel %vm460_vm13, 0.0, %v463_v59  ;;  %v825_v2 = vmul.f32 80.0, %v824_v62  ;;  %p1006_p5 = scmp.ne.s32.totalorder %s853_s14, %s1005_s15  ;;  %p1010_p6 = scmp.lt.s32.totalorder %s853_s14, %s853_s14 }
 0x36d   :  { %v466_v40 = vsel %vm465_vm15, %v464_v5, 0.0  ;;  %p1011_p7 = scmp.lt.s32.totalorder %s1009_s16, %s1005_s15 }
 0x36e   :  { %v589_v4 = vsel %vm585_vm14, 0.0, %v588_v26 }
 0x36f   :  { %v982_v0 = vpop.eup %981  ;;  %v591_v10 = vsel %vm590_vm9, %v589_v4, %v466_v40  ;;  %p1012_p8 = por %p1011_p7, %p1010_p6 }
 0x370   :  { %v713_v1 = vmul.f32 %v982_v0, %v700_v63 }
 0x371   :  { %p1013_p9 = pnand %p1012_p8, %p1006_p5 }
 0x372   :  { %v714_v8 = vsel %vm710_vm0, 0.0, %v713_v1 }
 0x373   :  { %v984_v7 = vpop.eup %983  ;;  %v716_v11 = vsel %vm715_vm10, %v714_v8, %v591_v10 }
 0x374   :  { %v838_v9 = vmul.f32 %v984_v7, %v825_v2 }
 0x376   :  { %v839_v13 = vsel %vm835_vm1, 0.0, %v838_v9 }
 0x377   :  { %v841_v12 = vsel %vm840_vm11, %v839_v13, %v716_v11 }
 0x378   :  { %844 = vst.msk [vmem:[#allocation3] sm:$0x1] %vm843_vm12, %v841_v12 }
 0x379   :  { %1016 = shalt.err (!%p1013_p9)
}
 0x37a   :  { %855 = dma.vmem_to_hbm [thread:$0]  %s853_s14, 16, %s1383_s3, [#allocation4]  }
 0x37b   :  { %1025 = dma.done.wait [#allocation4], 16  }
 0x37c   :  { %1026 = vsyncadd [#allocation4], 4294967280 }
 0x37d   :  { %1027 = dma.done.wait [#allocation6], 16  }
 0x37e   :  { %1028 = vsyncadd [#allocation6], 4294967280 }
 0x37f   :  { %872 = vsyncpa [#allocation4], 1 }
 0x380   :  { %873 = vsyncpa [#allocation6], 1 }

</bundles_post_ra>
